<compile_context>
chip_gen: v6e
topology: v6e:2x2x1
jax: 0.10.0
libtpu: 0.0.40
codegen_flags: <defaults>
</compile_context>

<pallas_src>
import jax
import jax.numpy as jnp
from jax.experimental import pallas as pl
from jax.experimental.pallas import tpu as pltpu

_LANE = 128  # pad everything to the vreg lane width / MXU tile


def _round_up(v, m):
    return ((v + m - 1) // m) * m


def _pad2d(a, rows, cols):
    r, c = a.shape
    return jnp.pad(a, ((0, rows - r), (0, cols - c)))


def _two_layer_gcn(s1, adj, b1, w2, b2):
    """adj @ (relu(adj @ s1 + b1) @ W2) + b2 with s1 = x @ W1 precomputed."""
    h = jnp.dot(adj, s1, preferred_element_type=jnp.float32)
    h = jnp.maximum(h + b1, 0.0)                       # gc1 bias + ReLU
    # F.dropout(h, p, training=self.training): inference -> identity.
    s2 = jnp.dot(h, w2, preferred_element_type=jnp.float32)
    return jnp.dot(adj, s2, preferred_element_type=jnp.float32) + b2


def _gcn_branches_kernel(x_ref, sadj_ref, sadja_ref, fadj_ref,
                         w1s_ref, b1s_ref, w2s_ref, b2s_ref,
                         w1g_ref, b1g_ref, w2g_ref, b2g_ref,
                         emb1_ref, com3_ref):
    """emb1 = (SGCN(x,sadj) + SGCN(x,sadj_a)) / 2 ;  com3 = GCN(x,fadj)."""
    x = x_ref[...]

    # --- SGCN branch: x @ W1 computed ONCE, reused for both adjacencies ----
    s1s = jnp.dot(x, w1s_ref[...], preferred_element_type=jnp.float32)
    y_ori = _two_layer_gcn(s1s, sadj_ref[...], b1s_ref[...],
                           w2s_ref[...], b2s_ref[...])
    y_aug = _two_layer_gcn(s1s, sadja_ref[...], b1s_ref[...],
                           w2s_ref[...], b2s_ref[...])
    emb1_ref[...] = (0.5 * (y_ori + y_aug)).astype(emb1_ref.dtype)

    # --- GCN branch on the feature graph (com3) -----------------------------
    s1g = jnp.dot(x, w1g_ref[...], preferred_element_type=jnp.float32)
    com3_ref[...] = _two_layer_gcn(s1g, fadj_ref[...], b1g_ref[...],
                                   w2g_ref[...], b2g_ref[...]
                                   ).astype(com3_ref.dtype)


def spatial_mgcn_gcn_branches(x, sadj, sadj_a, fadj, sgcn_params, gcn_params,
                              dropout_rate=0.5):
    """Fused forward of the SGCN (sadj & sadj_a, averaged) and GCN (fadj)
    branches of Spatial_MGCN in a single Pallas kernel launch."""
    del dropout_rate  # inference: dropout is identity
    w1s, b1s, w2s, b2s = sgcn_params
    w1g, b1g, w2g, b2g = gcn_params
    n, f_in = x.shape
    f_hid = w1s.shape[1]
    f_out = w2s.shape[1]

    # Zero-pad every dimension to a lane/MXU-friendly multiple of 128.
    n_p = _round_up(n, _LANE)
    fi_p = _round_up(f_in, _LANE)
    fh_p = _round_up(f_hid, _LANE)
    fo_p = _round_up(f_out, _LANE)

    x_p = _pad2d(x.astype(jnp.float32), n_p, fi_p)
    sadj_p = _pad2d(sadj.astype(jnp.float32), n_p, n_p)
    sadja_p = _pad2d(sadj_a.astype(jnp.float32), n_p, n_p)
    fadj_p = _pad2d(fadj.astype(jnp.float32), n_p, n_p)

    def pad_params(w1, b1, w2, b2):
        return (_pad2d(w1, fi_p, fh_p),
                _pad2d(b1.reshape(1, -1), 1, fh_p),
                _pad2d(w2, fh_p, fo_p),
                _pad2d(b2.reshape(1, -1), 1, fo_p))

    w1s_p, b1s_p, w2s_p, b2s_p = pad_params(w1s, b1s, w2s, b2s)
    w1g_p, b1g_p, w2g_p, b2g_p = pad_params(w1g, b1g, w2g, b2g)

    vmem = pl.BlockSpec(memory_space=pltpu.MemorySpace.VMEM)
    emb1_p, com3_p = pl.pallas_call(
        _gcn_branches_kernel,
        out_shape=(jax.ShapeDtypeStruct((n_p, fo_p), jnp.float32),
                   jax.ShapeDtypeStruct((n_p, fo_p), jnp.float32)),
        in_specs=[vmem] * 12,
        out_specs=(vmem, vmem),
        # Tiny problem -> single full-array block, no grid.  At realistic N
        # (thousands of nodes): row-tile sadj/sadj_a/fadj and both outputs
        # over a grid axis marked "parallel", raise vmem_limit_bytes, and cast
        # x/adj/W to bf16 with f32 accumulation on the MXU.
    )(x_p, sadj_p, sadja_p, fadj_p,
      w1s_p, b1s_p, w2s_p, b2s_p,
      w1g_p, b1g_p, w2g_p, b2g_p)

    return emb1_p[:n, :f_out], com3_p[:n, :f_out]


def init_gcn_params(key, nfeat, nhid, nout):
    """Deterministic init mimicking GraphConvolution.reset_parameters():
    uniform(-1/sqrt(f_out), 1/sqrt(f_out)) for both weight and bias."""
    k1, k2, k3, k4 = jax.random.split(key, 4)
    s1 = 1.0 / jnp.sqrt(jnp.float32(nhid))
    s2 = 1.0 / jnp.sqrt(jnp.float32(nout))
    w1 = jax.random.uniform(k1, (nfeat, nhid), jnp.float32, -s1, s1)
    b1 = jax.random.uniform(k2, (nhid,), jnp.float32, -s1, s1)
    w2 = jax.random.uniform(k3, (nhid, nout), jnp.float32, -s2, s2)
    b2 = jax.random.uniform(k4, (nout,), jnp.float32, -s2, s2)
    return (w1, b1, w2, b2)


def gcn_reference(x, adj, params):
    """Pure-JAX 2-layer GCN reference for sanity checking."""
    w1, b1, w2, b2 = params
    h = jnp.maximum(adj @ (x @ w1) + b1, 0.0)
    return adj @ (h @ w2) + b2


if __name__ == "__main__":
    key = jax.random.PRNGKey(0)
    k_x, k_s, k_sa, k_f, k_ps, k_pg = jax.random.split(key, 6)

    # Matches Spatial_MGCN's (nfeat, nhid1, nhid2) at small scale.
    N, NFEAT, NHID1, NHID2 = 16, 32, 32, 16

    x = jax.random.normal(k_x, (N, NFEAT), jnp.float32)

    def rand_norm_adj(k, p=0.3):
        # Symmetric row-normalized adjacency with self loops (dense).
        a = (jax.random.uniform(k, (N, N)) < p).astype(jnp.float32)
        a = jnp.maximum(a, a.T) + jnp.eye(N, dtype=jnp.float32)
        return a / jnp.sum(a, axis=1, keepdims=True)

    sadj = rand_norm_adj(k_s)      # spatial adjacency
    sadj_a = rand_norm_adj(k_sa)   # augmented spatial adjacency
    fadj = rand_norm_adj(k_f)      # feature-graph adjacency

    sgcn_params = init_gcn_params(k_ps, NFEAT, NHID1, NHID2)
    gcn_params = init_gcn_params(k_pg, NFEAT, NHID1, NHID2)

    emb1, com3 = spatial_mgcn_gcn_branches(x, sadj, sadj_a, fadj,
                                           sgcn_params, gcn_params)
    emb1, com3 = jax.block_until_ready((emb1, com3))

    # References: emb1 = (SGCN(x,sadj)+SGCN(x,sadj_a))/2 ; com3 = GCN(x,fadj).
    emb1_ref = 0.5 * (gcn_reference(x, sadj, sgcn_params)
                      + gcn_reference(x, sadj_a, sgcn_params))
    com3_ref = gcn_reference(x, fadj, gcn_params)

    assert emb1.shape == (N, NHID2) and com3.shape == (N, NHID2)
    assert jnp.allclose(emb1, emb1_ref, atol=1e-4, rtol=1e-4)
    assert jnp.allclose(com3, com3_ref, atol=1e-4, rtol=1e-4)

    print("KERNEL_OK")
</pallas_src>

<mosaic_0001>
module attributes {stable_mosaic.version = 11 : i64} {
  func.func @_gcn_branches_kernel(%arg0: memref<128x128xf32, #tpu.memory_space<vmem>>, %arg1: memref<128x128xf32, #tpu.memory_space<vmem>>, %arg2: memref<128x128xf32, #tpu.memory_space<vmem>>, %arg3: memref<128x128xf32, #tpu.memory_space<vmem>>, %arg4: memref<128x128xf32, #tpu.memory_space<vmem>>, %arg5: memref<1x128xf32, #tpu.memory_space<vmem>>, %arg6: memref<128x128xf32, #tpu.memory_space<vmem>>, %arg7: memref<1x128xf32, #tpu.memory_space<vmem>>, %arg8: memref<128x128xf32, #tpu.memory_space<vmem>>, %arg9: memref<1x128xf32, #tpu.memory_space<vmem>>, %arg10: memref<128x128xf32, #tpu.memory_space<vmem>>, %arg11: memref<1x128xf32, #tpu.memory_space<vmem>>, %arg12: memref<128x128xf32, #tpu.memory_space<vmem>>, %arg13: memref<128x128xf32, #tpu.memory_space<vmem>>) attributes {dimension_semantics = [], scalar_prefetch = 0 : i64, scratch_operands = 0 : i64, tpu.core_type = #tpu.core_type<tc>} {
    %c0 = arith.constant 0 : index
    %c0_0 = arith.constant 0 : index
    %0 = vector.load %arg0[%c0, %c0_0] : memref<128x128xf32, #tpu.memory_space<vmem>>, vector<128x128xf32>
    %c0_1 = arith.constant 0 : index
    %c0_2 = arith.constant 0 : index
    %1 = vector.load %arg4[%c0_1, %c0_2] : memref<128x128xf32, #tpu.memory_space<vmem>>, vector<128x128xf32>
    %cst = arith.constant dense<0.000000e+00> : vector<128x128xf32>
    %2 = tpu.matmul %0, %1, %cst {dimension_numbers = #tpu.dot_dimension_numbers<[1], [0], [0], [1], [0, 0, 1, 1], [], []>} : vector<128x128xf32>, vector<128x128xf32>, vector<128x128xf32> -> vector<128x128xf32>
    %c0_3 = arith.constant 0 : index
    %c0_4 = arith.constant 0 : index
    %3 = vector.load %arg1[%c0_3, %c0_4] : memref<128x128xf32, #tpu.memory_space<vmem>>, vector<128x128xf32>
    %c0_5 = arith.constant 0 : index
    %c0_6 = arith.constant 0 : index
    %4 = vector.load %arg5[%c0_5, %c0_6] : memref<1x128xf32, #tpu.memory_space<vmem>>, vector<1x128xf32>
    %c0_7 = arith.constant 0 : index
    %c0_8 = arith.constant 0 : index
    %5 = vector.load %arg6[%c0_7, %c0_8] : memref<128x128xf32, #tpu.memory_space<vmem>>, vector<128x128xf32>
    %c0_9 = arith.constant 0 : index
    %c0_10 = arith.constant 0 : index
    %6 = vector.load %arg7[%c0_9, %c0_10] : memref<1x128xf32, #tpu.memory_space<vmem>>, vector<1x128xf32>
    %cst_11 = arith.constant dense<0.000000e+00> : vector<128x128xf32>
    %7 = tpu.matmul %3, %2, %cst_11 {dimension_numbers = #tpu.dot_dimension_numbers<[1], [0], [0], [1], [0, 0, 1, 1], [], []>} : vector<128x128xf32>, vector<128x128xf32>, vector<128x128xf32> -> vector<128x128xf32>
    %8 = vector.broadcast %4 : vector<1x128xf32> to vector<128x128xf32>
    %9 = arith.addf %7, %8 : vector<128x128xf32>
    %cst_12 = arith.constant 0.000000e+00 : f32
    %10 = vector.broadcast %cst_12 : f32 to vector<128x128xf32>
    %11 = arith.maximumf %9, %10 : vector<128x128xf32>
    %cst_13 = arith.constant dense<0.000000e+00> : vector<128x128xf32>
    %12 = tpu.matmul %11, %5, %cst_13 {dimension_numbers = #tpu.dot_dimension_numbers<[1], [0], [0], [1], [0, 0, 1, 1], [], []>} : vector<128x128xf32>, vector<128x128xf32>, vector<128x128xf32> -> vector<128x128xf32>
    %cst_14 = arith.constant dense<0.000000e+00> : vector<128x128xf32>
    %13 = tpu.matmul %3, %12, %cst_14 {dimension_numbers = #tpu.dot_dimension_numbers<[1], [0], [0], [1], [0, 0, 1, 1], [], []>} : vector<128x128xf32>, vector<128x128xf32>, vector<128x128xf32> -> vector<128x128xf32>
    %14 = vector.broadcast %6 : vector<1x128xf32> to vector<128x128xf32>
    %15 = arith.addf %13, %14 : vector<128x128xf32>
    %c0_15 = arith.constant 0 : index
    %c0_16 = arith.constant 0 : index
    %16 = vector.load %arg2[%c0_15, %c0_16] : memref<128x128xf32, #tpu.memory_space<vmem>>, vector<128x128xf32>
    %c0_17 = arith.constant 0 : index
    %c0_18 = arith.constant 0 : index
    %17 = vector.load %arg5[%c0_17, %c0_18] : memref<1x128xf32, #tpu.memory_space<vmem>>, vector<1x128xf32>
    %c0_19 = arith.constant 0 : index
    %c0_20 = arith.constant 0 : index
    %18 = vector.load %arg6[%c0_19, %c0_20] : memref<128x128xf32, #tpu.memory_space<vmem>>, vector<128x128xf32>
    %c0_21 = arith.constant 0 : index
    %c0_22 = arith.constant 0 : index
    %19 = vector.load %arg7[%c0_21, %c0_22] : memref<1x128xf32, #tpu.memory_space<vmem>>, vector<1x128xf32>
    %cst_23 = arith.constant dense<0.000000e+00> : vector<128x128xf32>
    %20 = tpu.matmul %16, %2, %cst_23 {dimension_numbers = #tpu.dot_dimension_numbers<[1], [0], [0], [1], [0, 0, 1, 1], [], []>} : vector<128x128xf32>, vector<128x128xf32>, vector<128x128xf32> -> vector<128x128xf32>
    %21 = vector.broadcast %17 : vector<1x128xf32> to vector<128x128xf32>
    %22 = arith.addf %20, %21 : vector<128x128xf32>
    %cst_24 = arith.constant 0.000000e+00 : f32
    %23 = vector.broadcast %cst_24 : f32 to vector<128x128xf32>
    %24 = arith.maximumf %22, %23 : vector<128x128xf32>
    %cst_25 = arith.constant dense<0.000000e+00> : vector<128x128xf32>
    %25 = tpu.matmul %24, %18, %cst_25 {dimension_numbers = #tpu.dot_dimension_numbers<[1], [0], [0], [1], [0, 0, 1, 1], [], []>} : vector<128x128xf32>, vector<128x128xf32>, vector<128x128xf32> -> vector<128x128xf32>
    %cst_26 = arith.constant dense<0.000000e+00> : vector<128x128xf32>
    %26 = tpu.matmul %16, %25, %cst_26 {dimension_numbers = #tpu.dot_dimension_numbers<[1], [0], [0], [1], [0, 0, 1, 1], [], []>} : vector<128x128xf32>, vector<128x128xf32>, vector<128x128xf32> -> vector<128x128xf32>
    %27 = vector.broadcast %19 : vector<1x128xf32> to vector<128x128xf32>
    %28 = arith.addf %26, %27 : vector<128x128xf32>
    %29 = arith.addf %15, %28 : vector<128x128xf32>
    %cst_27 = arith.constant 5.000000e-01 : f32
    %30 = vector.broadcast %cst_27 : f32 to vector<128x128xf32>
    %31 = arith.mulf %30, %29 : vector<128x128xf32>
    %c0_28 = arith.constant 0 : index
    %c0_29 = arith.constant 0 : index
    %32 = vector.load %arg12[%c0_28, %c0_29] : memref<128x128xf32, #tpu.memory_space<vmem>>, vector<128x128xf32>
    tpu.vector_store %arg12[%c0_28, %c0_29], %31 {strides = array<i32>} : memref<128x128xf32, #tpu.memory_space<vmem>>, vector<128x128xf32>,
    %c0_30 = arith.constant 0 : index
    %c0_31 = arith.constant 0 : index
    %33 = vector.load %arg8[%c0_30, %c0_31] : memref<128x128xf32, #tpu.memory_space<vmem>>, vector<128x128xf32>
    %cst_32 = arith.constant dense<0.000000e+00> : vector<128x128xf32>
    %34 = tpu.matmul %0, %33, %cst_32 {dimension_numbers = #tpu.dot_dimension_numbers<[1], [0], [0], [1], [0, 0, 1, 1], [], []>} : vector<128x128xf32>, vector<128x128xf32>, vector<128x128xf32> -> vector<128x128xf32>
    %c0_33 = arith.constant 0 : index
    %c0_34 = arith.constant 0 : index
    %35 = vector.load %arg3[%c0_33, %c0_34] : memref<128x128xf32, #tpu.memory_space<vmem>>, vector<128x128xf32>
    %c0_35 = arith.constant 0 : index
    %c0_36 = arith.constant 0 : index
    %36 = vector.load %arg9[%c0_35, %c0_36] : memref<1x128xf32, #tpu.memory_space<vmem>>, vector<1x128xf32>
    %c0_37 = arith.constant 0 : index
    %c0_38 = arith.constant 0 : index
    %37 = vector.load %arg10[%c0_37, %c0_38] : memref<128x128xf32, #tpu.memory_space<vmem>>, vector<128x128xf32>
    %c0_39 = arith.constant 0 : index
    %c0_40 = arith.constant 0 : index
    %38 = vector.load %arg11[%c0_39, %c0_40] : memref<1x128xf32, #tpu.memory_space<vmem>>, vector<1x128xf32>
    %cst_41 = arith.constant dense<0.000000e+00> : vector<128x128xf32>
    %39 = tpu.matmul %35, %34, %cst_41 {dimension_numbers = #tpu.dot_dimension_numbers<[1], [0], [0], [1], [0, 0, 1, 1], [], []>} : vector<128x128xf32>, vector<128x128xf32>, vector<128x128xf32> -> vector<128x128xf32>
    %40 = vector.broadcast %36 : vector<1x128xf32> to vector<128x128xf32>
    %41 = arith.addf %39, %40 : vector<128x128xf32>
    %cst_42 = arith.constant 0.000000e+00 : f32
    %42 = vector.broadcast %cst_42 : f32 to vector<128x128xf32>
    %43 = arith.maximumf %41, %42 : vector<128x128xf32>
    %cst_43 = arith.constant dense<0.000000e+00> : vector<128x128xf32>
    %44 = tpu.matmul %43, %37, %cst_43 {dimension_numbers = #tpu.dot_dimension_numbers<[1], [0], [0], [1], [0, 0, 1, 1], [], []>} : vector<128x128xf32>, vector<128x128xf32>, vector<128x128xf32> -> vector<128x128xf32>
    %cst_44 = arith.constant dense<0.000000e+00> : vector<128x128xf32>
    %45 = tpu.matmul %35, %44, %cst_44 {dimension_numbers = #tpu.dot_dimension_numbers<[1], [0], [0], [1], [0, 0, 1, 1], [], []>} : vector<128x128xf32>, vector<128x128xf32>, vector<128x128xf32> -> vector<128x128xf32>
    %46 = vector.broadcast %38 : vector<1x128xf32> to vector<128x128xf32>
    %47 = arith.addf %45, %46 : vector<128x128xf32>
    %c0_45 = arith.constant 0 : index
    %c0_46 = arith.constant 0 : index
    %48 = vector.load %arg13[%c0_45, %c0_46] : memref<128x128xf32, #tpu.memory_space<vmem>>, vector<128x128xf32>
    tpu.vector_store %arg13[%c0_45, %c0_46], %47 {strides = array<i32>} : memref<128x128xf32, #tpu.memory_space<vmem>>, vector<128x128xf32>,
    return
  }
}

</mosaic_0001>

<bundles_post_ra>
// kernel: tpu_custom_call.1
= control target key start
LH: loop header
LB: loop body
LE: loop exit
PB: predicated region body
PF: predicated region fallthrough
CT: control target
= control target key end

     0   :  { %19 = vsyncpa [#allocation3], 0  ;;  %s4072_s0 = inlined_call_operand.hbm [shape: f32[128,128], index: 0, kind: input, shape index: {}]   ;;  %s4073_s1 = inlined_call_operand.hbm [shape: f32[128,128], index: 1, kind: input, shape index: {}]   ;;  %s4074_s2 = inlined_call_operand.hbm [shape: f32[128,128], index: 2, kind: input, shape index: {}]   ;;  %s4075_s3 = inlined_call_operand.hbm [shape: f32[128,128], index: 3, kind: input, shape index: {}]   ;;  %s4076_s4 = inlined_call_operand.hbm [shape: f32[128,128], index: 4, kind: input, shape index: {}]   ;;  %s4077_s5 = inlined_call_operand.vmem [shape: f32[1,128], index: 5, kind: input, shape index: {}]   ;;  %s4078_s6 = inlined_call_operand.hbm [shape: f32[128,128], index: 6, kind: input, shape index: {}]   ;;  %s4079_s7 = inlined_call_operand.vmem [shape: f32[1,128], index: 7, kind: input, shape index: {}]   ;;  %s4080_s8 = inlined_call_operand.hbm [shape: f32[128,128], index: 8, kind: input, shape index: {}]   ;;  %s4081_s9 = inlined_call_operand.vmem [shape: f32[1,128], index: 9, kind: input, shape index: {}]   ;;  %s4082_s10 = inlined_call_operand.hbm [shape: f32[128,128], index: 10, kind: input, shape index: {}]   ;;  %s4083_s11 = inlined_call_operand.vmem [shape: f32[1,128], index: 11, kind: input, shape index: {}]   ;;  %s4084_s12 = inlined_call_operand.hbm [shape: f32[128,128], index: 12, kind: output, shape index: {0}]   ;;  %s4085_s13 = inlined_call_operand.hbm [shape: f32[128,128], index: 13, kind: output, shape index: {1}]  }
   0x1   :  { %20 = vsyncpa [#allocation6], 0 }
   0x2   :  { %21 = vsyncpa [#allocation9], 0 }
   0x3   :  { %22 = vsyncpa [#allocation12], 0 }
   0x4   :  { %23 = vsyncpa [#allocation15], 0 }
   0x5   :  { %24 = vsyncpa [#allocation4], 0 }
   0x6   :  { %25 = vsyncpa [#allocation18], 0  ;;  %s3285_s25 = smov [#allocation5]   ;;  %s3286_s27 = smov [#allocation8]  }
   0x7   :  { %s43_s26 = sshll.u32 %s3285_s25, 4  ;;  %s67_s28 = sshll.u32 %s3286_s27, 4  ;;  %s44_s26 = int_to_ptr.vmem [resolvable:$true] %s43_s26  ;;  %s68_s28 = int_to_ptr.vmem [resolvable:$true] %s67_s28 }
   0x8   :  { %s3079_s29 = scalar_lea.vmem %s44_s26, 2048  ;;  %p3084_p1 = scmp.lt.s32.totalorder %s44_s26, %s44_s26 }
   0x9   :  { %p3080_p0 = scmp.ne.s32.totalorder %s44_s26, %s3079_s29  ;;  %p3085_p2 = scmp.lt.s32.totalorder %s3079_s29, %s3079_s29 }
   0xb   :  { %p3086_p3 = por %p3085_p2, %p3084_p1 }
   0xd   :  { %p3087_p4 = pnand %p3086_p3, %p3080_p0 }
   0xf   :  { %3090 = shalt.err (!%p3087_p4)
}
  0x10   :  { %s3287_s30 = smov 128   ;;  %s3288_s14 = smov 8  }
  0x11   :  { %49 = dma.hbm_to_vmem [thread:$0]  %s4073_s1, 2048, %s44_s26, [#allocation6], %s3287_s30, %s3287_s30, %s3288_s14  }
  0x12   :  { %s3099_s17 = scalar_lea.vmem %s68_s28, 2048  ;;  %p3104_p6 = scmp.lt.s32.totalorder %s68_s28, %s68_s28 }
  0x13   :  { %p3100_p5 = scmp.ne.s32.totalorder %s68_s28, %s3099_s17  ;;  %p3105_p7 = scmp.lt.s32.totalorder %s3099_s17, %s3099_s17 }
  0x15   :  { %p3106_p8 = por %p3105_p7, %p3104_p6 }
  0x17   :  { %p3107_p9 = pnand %p3106_p8, %p3100_p5 }
  0x19   :  { %3110 = shalt.err (!%p3107_p9)
}
  0x1a   :  { %73 = dma.hbm_to_vmem [thread:$0]  %s4075_s3, 2048, %s68_s28, [#allocation9], %s3287_s30, %s3287_s30, %s3288_s14  }
  0x1b   :  { %s3289_s20 = smov [#allocation11]   ;;  %s3290_s22 = smov [#allocation2]  }
  0x1c   :  { %s93_s21 = sshll.u32 %s3289_s20, 4  ;;  %s31_s23 = sshll.u32 %s3290_s22, 4  ;;  %s94_s21 = int_to_ptr.vmem [resolvable:$true] %s93_s21  ;;  %s32_s23 = int_to_ptr.vmem [resolvable:$true] %s31_s23 }
  0x1d   :  { %s3119_s1 = scalar_lea.vmem %s94_s21, 2048  ;;  %p3124_p11 = scmp.lt.s32.totalorder %s94_s21, %s94_s21 }
  0x1e   :  { %p3120_p10 = scmp.ne.s32.totalorder %s94_s21, %s3119_s1  ;;  %p3125_p12 = scmp.lt.s32.totalorder %s3119_s1, %s3119_s1 }
  0x20   :  { %p3126_p13 = por %p3125_p12, %p3124_p11 }
  0x22   :  { %p3127_p0 = pnand %p3126_p13, %p3120_p10 }
  0x24   :  { %3130 = shalt.err (!%p3127_p0)
}
  0x25   :  { %99 = dma.hbm_to_vmem [thread:$0]  %s4078_s6, 2048, %s94_s21, [#allocation12], %s3287_s30, %s3287_s30, %s3288_s14  }
  0x26   :  { %s3139_s3 = scalar_lea.vmem %s32_s23, 2048  ;;  %p3144_p2 = scmp.lt.s32.totalorder %s32_s23, %s32_s23 }
  0x27   :  { %p3140_p1 = scmp.ne.s32.totalorder %s32_s23, %s3139_s3  ;;  %p3145_p3 = scmp.lt.s32.totalorder %s3139_s3, %s3139_s3 }
  0x29   :  { %p3146_p4 = por %p3145_p3, %p3144_p2 }
  0x2b   :  { %p3147_p5 = pnand %p3146_p4, %p3140_p1 }
  0x2d   :  { %3150 = shalt.err (!%p3147_p5)
}
  0x2e   :  { %37 = dma.hbm_to_vmem [thread:$0]  %s4072_s0, 2048, %s32_s23, [#allocation3], %s3287_s30, %s3287_s30, %s3288_s14  }
  0x2f   :  { %s3291_s28 = smov [#allocation7]   ;;  %s3292_s15 = smov [#allocation10]  }
  0x30   :  { %s55_s29 = sshll.u32 %s3291_s28, 4  ;;  %s79_s16 = sshll.u32 %s3292_s15, 4  ;;  %s56_s29 = int_to_ptr.vmem [resolvable:$true] %s55_s29  ;;  %s80_s16 = int_to_ptr.vmem [resolvable:$true] %s79_s16 }
  0x31   :  { %s3159_s6 = scalar_lea.vmem %s56_s29, 2048  ;;  %p3164_p7 = scmp.lt.s32.totalorder %s56_s29, %s56_s29 }
  0x32   :  { %p3160_p6 = scmp.ne.s32.totalorder %s56_s29, %s3159_s6  ;;  %p3165_p8 = scmp.lt.s32.totalorder %s3159_s6, %s3159_s6 }
  0x34   :  { %p3166_p9 = por %p3165_p8, %p3164_p7 }
  0x36   :  { %p3167_p10 = pnand %p3166_p9, %p3160_p6 }
  0x38   :  { %3170 = shalt.err (!%p3167_p10)
}
  0x39   :  { %61 = dma.hbm_to_vmem [thread:$0]  %s4074_s2, 2048, %s56_s29, [#allocation6], %s3287_s30, %s3287_s30, %s3288_s14  }
  0x3a   :  { %s3179_s0 = scalar_lea.vmem %s80_s16, 2048  ;;  %p3184_p12 = scmp.lt.s32.totalorder %s80_s16, %s80_s16 }
  0x3b   :  { %p3180_p11 = scmp.ne.s32.totalorder %s80_s16, %s3179_s0  ;;  %p3185_p13 = scmp.lt.s32.totalorder %s3179_s0, %s3179_s0 }
  0x3d   :  { %p3186_p0 = por %p3185_p13, %p3184_p12 }
  0x3f   :  { %p3187_p1 = pnand %p3186_p0, %p3180_p11 }
  0x41   :  { %3190 = shalt.err (!%p3187_p1)
}
  0x42   :  { %85 = dma.hbm_to_vmem [thread:$0]  %s4076_s4, 2048, %s80_s16, [#allocation9], %s3287_s30, %s3287_s30, %s3288_s14  }
  0x43   :  { %s3293_s21 = smov [#allocation13]   ;;  %s3294_s23 = smov [#allocation14]  }
  0x44   :  { %s107_s22 = sshll.u32 %s3293_s21, 4  ;;  %s121_s1 = sshll.u32 %s3294_s23, 4  ;;  %s108_s22 = int_to_ptr.vmem [resolvable:$true] %s107_s22  ;;  %s122_s1 = int_to_ptr.vmem [resolvable:$true] %s121_s1 }
  0x45   :  { %s3199_s2 = scalar_lea.vmem %s108_s22, 2048  ;;  %p3204_p3 = scmp.lt.s32.totalorder %s108_s22, %s108_s22 }
  0x46   :  { %p3200_p2 = scmp.ne.s32.totalorder %s108_s22, %s3199_s2  ;;  %p3205_p4 = scmp.lt.s32.totalorder %s3199_s2, %s3199_s2 }
  0x48   :  { %p3206_p5 = por %p3205_p4, %p3204_p3 }
  0x4a   :  { %p3207_p6 = pnand %p3206_p5, %p3200_p2 }
  0x4c   :  { %3210 = shalt.err (!%p3207_p6)
}
  0x4d   :  { %113 = dma.hbm_to_vmem [thread:$0]  %s4080_s8, 2048, %s108_s22, [#allocation12], %s3287_s30, %s3287_s30, %s3288_s14  }
  0x4e   :  { %s3219_s4 = scalar_lea.vmem %s122_s1, 2048  ;;  %p3224_p8 = scmp.lt.s32.totalorder %s122_s1, %s122_s1 }
  0x4f   :  { %p3220_p7 = scmp.ne.s32.totalorder %s122_s1, %s3219_s4  ;;  %p3225_p9 = scmp.lt.s32.totalorder %s3219_s4, %s3219_s4 }
  0x51   :  { %p3226_p10 = por %p3225_p9, %p3224_p8 }
  0x53   :  { %p3227_p11 = pnand %p3226_p10, %p3220_p7 }
  0x55   :  { %3230 = shalt.err (!%p3227_p11)
}
  0x56   :  { %127 = dma.hbm_to_vmem [thread:$0]  %s4082_s10, 2048, %s122_s1, [#allocation15], %s3287_s30, %s3287_s30, %s3288_s14  }
  0x57   :  { %3271 = dma.done.wait [#allocation3], 2048  }
  0x58   :  { %3272 = vsyncadd [#allocation3], 4294965248 }
  0x59   :  { %3273 = dma.done.wait [#allocation6], 4096  }
  0x5a   :  { %3274 = vsyncadd [#allocation6], 4294963200 }
  0x5b   :  { %3275 = dma.done.wait [#allocation9], 4096  }
  0x5c   :  { %3276 = vsyncadd [#allocation9], 4294963200 }
  0x5d   :  { %3277 = dma.done.wait [#allocation12], 4096  }
  0x5e   :  { %3278 = vsyncadd [#allocation12], 4294963200 }
  0x5f   :  { %3279 = dma.done.wait [#allocation15], 2048  }
  0x60   :  { %3280 = vsyncadd [#allocation15], 4294965248  ;;  %v185_v0 = vld [vmem:[#allocation10 + $0x78] sm:$0xff]  ;;  %v184_v1 = vld [vmem:[#allocation10 + $0x70] sm:$0xff] }
  0x61   :  { %2410 = vmatprep.subr.mxu0 %v185_v0  ;;  %v183_v2 = vld [vmem:[#allocation10 + $0x68] sm:$0xff]  ;;  %v182_v3 = vld [vmem:[#allocation10 + $0x60] sm:$0xff]  ;;  %v181_v5 = vld [vmem:[#allocation10 + $0x58] sm:$0xff] }
  0x62   :  { %2411 = vmatpush3.msra.mxu0 %v185_v0  ;;  %v154_v4 = vld [vmem:[#allocation2] sm:$0xff]  ;;  %v180_v6 = vld [vmem:[#allocation10 + $0x50] sm:$0xff]  ;;  %v179_v7 = vld [vmem:[#allocation10 + $0x48] sm:$0xff] }
  0x63   :  { %2412 = vmatprep.subr.mxu0 %v184_v1  ;;  %2442 = vmatprep.mubr.f32.mxu0 %v154_v4  ;;  %v178_v8 = vld [vmem:[#allocation10 + $0x40] sm:$0xff]  ;;  %v177_v9 = vld [vmem:[#allocation10 + $0x38] sm:$0xff]  ;;  %v176_v10 = vld [vmem:[#allocation10 + $0x30] sm:$0xff] }
  0x64   :  { %2413 = vmatpush3.msra.mxu0 %v184_v1  ;;  %v175_v11 = vld [vmem:[#allocation10 + $0x28] sm:$0xff]  ;;  %v174_v12 = vld [vmem:[#allocation10 + $0x20] sm:$0xff]  ;;  %v173_v13 = vld [vmem:[#allocation10 + $0x18] sm:$0xff] }
  0x65   :  { %2414 = vmatprep.subr.mxu0 %v183_v2  ;;  %v172_v14 = vld [vmem:[#allocation10 + $0x10] sm:$0xff]  ;;  %v171_v15 = vld [vmem:[#allocation10 + $0x8] sm:$0xff]  ;;  %v170_v16 = vld [vmem:[#allocation10] sm:$0xff] }
  0x66   :  { %2415 = vmatpush3.msra.mxu0 %v183_v2  ;;  %v3415_v17 = vld [vmem:[#allocation2 + $0x8] sm:$0xff]  ;;  %v3417_v18 = vld [vmem:[#allocation11 + $0x78] sm:$0xff]  ;;  %v3419_v19 = vld [vmem:[#allocation2 + $0x10] sm:$0xff] }
  0x67   :  { %2416 = vmatprep.subr.mxu0 %v182_v3  ;;  %v3421_v20 = vld [vmem:[#allocation11 + $0x70] sm:$0xff]  ;;  %v3426_v21 = vld [vmem:[#allocation2 + $0x18] sm:$0xff]  ;;  %v3429_v22 = vld [vmem:[#allocation2 + $0x20] sm:$0xff] }
  0x68   :  { %2417 = vmatpush3.msra.mxu0 %v182_v3  ;;  %4101 = vst [vmem:[#allocation26_spill] sm:$0xff] %v3429_v22  ;;  %v3435_v23 = vld [vmem:[#allocation2 + $0x28] sm:$0xff]  ;;  %v3437_v24 = vld [vmem:[#allocation2 + $0x30] sm:$0xff]  ;;  %v3441_v25 = vld [vmem:[#allocation2 + $0x38] sm:$0xff] }
  0x69   :  { %2418 = vmatprep.subr.mxu0 %v181_v5  ;;  %4102 = vst [vmem:[#allocation27_spill] sm:$0xff] %v3435_v23  ;;  %4103 = vst [vmem:[#allocation28_spill] sm:$0xff] %v3437_v24  ;;  %v3443_v26 = vld [vmem:[#allocation2 + $0x40] sm:$0xff]  ;;  %v3447_v27 = vld [vmem:[#allocation2 + $0x48] sm:$0xff] }
  0x6a   :  { %2419 = vmatpush3.msra.mxu0 %v181_v5  ;;  %4104 = vst [vmem:[#allocation29_spill] sm:$0xff] %v3441_v25  ;;  %4105 = vst [vmem:[#allocation30_spill] sm:$0xff] %v3443_v26  ;;  %v3449_v28 = vld [vmem:[#allocation2 + $0x50] sm:$0xff]  ;;  %v3453_v29 = vld [vmem:[#allocation2 + $0x58] sm:$0xff] }
  0x6b   :  { %2420 = vmatprep.subr.mxu0 %v180_v6  ;;  %4106 = vst [vmem:[#allocation31_spill] sm:$0xff] %v3447_v27  ;;  %4107 = vst [vmem:[#allocation32_spill] sm:$0xff] %v3449_v28  ;;  %v3455_v30 = vld [vmem:[#allocation2 + $0x60] sm:$0xff]  ;;  %v3459_v31 = vld [vmem:[#allocation2 + $0x68] sm:$0xff] }
  0x6c   :  { %2421 = vmatpush3.msra.mxu0 %v180_v6  ;;  %4108 = vst [vmem:[#allocation33_spill] sm:$0xff] %v3453_v29  ;;  %4109 = vst [vmem:[#allocation34_spill] sm:$0xff] %v3455_v30  ;;  %v3461_v32 = vld [vmem:[#allocation2 + $0x70] sm:$0xff]  ;;  %v3465_v33 = vld [vmem:[#allocation2 + $0x78] sm:$0xff] }
  0x6d   :  { %2422 = vmatprep.subr.mxu0 %v179_v7  ;;  %4110 = vst [vmem:[#allocation35_spill] sm:$0xff] %v3459_v31  ;;  %4111 = vst [vmem:[#allocation36_spill] sm:$0xff] %v3461_v32  ;;  %v3468_v34 = vld [vmem:[#allocation11 + $0x68] sm:$0xff]  ;;  %v3472_v35 = vld [vmem:[#allocation11 + $0x60] sm:$0xff] }
  0x6e   :  { %2423 = vmatpush3.msra.mxu0 %v179_v7  ;;  %4112 = vst [vmem:[#allocation37_spill] sm:$0xff] %v3465_v33  ;;  %v3476_v36 = vld [vmem:[#allocation11 + $0x58] sm:$0xff]  ;;  %v3480_v37 = vld [vmem:[#allocation11 + $0x50] sm:$0xff]  ;;  %v3484_v38 = vld [vmem:[#allocation11 + $0x48] sm:$0xff] }
  0x6f   :  { %2424 = vmatprep.subr.mxu0 %v178_v8  ;;  %v3488_v39 = vld [vmem:[#allocation11 + $0x40] sm:$0xff]  ;;  %v3492_v40 = vld [vmem:[#allocation11 + $0x38] sm:$0xff]  ;;  %v3496_v41 = vld [vmem:[#allocation11 + $0x30] sm:$0xff] }
  0x70   :  { %2425 = vmatpush3.msra.mxu0 %v178_v8  ;;  %v3500_v42 = vld [vmem:[#allocation11 + $0x28] sm:$0xff]  ;;  %v3504_v43 = vld [vmem:[#allocation11 + $0x20] sm:$0xff]  ;;  %v3508_v44 = vld [vmem:[#allocation11 + $0x18] sm:$0xff] }
  0x71   :  { %2426 = vmatprep.subr.mxu0 %v177_v9  ;;  %v3512_v45 = vld [vmem:[#allocation11 + $0x10] sm:$0xff]  ;;  %v3516_v46 = vld [vmem:[#allocation11 + $0x8] sm:$0xff]  ;;  %v3520_v47 = vld [vmem:[#allocation11] sm:$0xff] }
  0x72   :  { %2427 = vmatpush3.msra.mxu0 %v177_v9  ;;  %v3524_v48 = vld [vmem:[#allocation5] sm:$0xff]  ;;  %v3590_v1 = vld [vmem:[#allocation5 + $0x8] sm:$0xff]  ;;  %v3593_v2 = vld [vmem:[#allocation5 + $0x10] sm:$0xff] }
  0x73   :  { %2428 = vmatprep.subr.mxu0 %v176_v10  ;;  %2498 = vmatprep.mubr.f32.mxu1 %v3524_v48  ;;  %v3598_v3 = vld [vmem:[#allocation5 + $0x18] sm:$0xff]  ;;  %v3600_v4 = vld [vmem:[#allocation5 + $0x20] sm:$0xff]  ;;  %v3604_v5 = vld [vmem:[#allocation5 + $0x28] sm:$0xff] }
  0x74   :  { %2429 = vmatpush3.msra.mxu0 %v176_v10  ;;  %v3606_v6 = vld [vmem:[#allocation5 + $0x30] sm:$0xff]  ;;  %v3610_v7 = vld [vmem:[#allocation5 + $0x38] sm:$0xff]  ;;  %v3612_v8 = vld [vmem:[#allocation5 + $0x40] sm:$0xff] }
  0x75   :  { %2430 = vmatprep.subr.mxu0 %v175_v11  ;;  %v3616_v9 = vld [vmem:[#allocation5 + $0x48] sm:$0xff]  ;;  %v3618_v10 = vld [vmem:[#allocation5 + $0x50] sm:$0xff] }
  0x76   :  { %2431 = vmatpush3.msra.mxu0 %v175_v11  ;;  %v3622_v11 = vld [vmem:[#allocation5 + $0x58] sm:$0xff] }
  0x77   :  { %2432 = vmatprep.subr.mxu0 %v174_v12 }
  0x78   :  { %2433 = vmatpush3.msra.mxu0 %v174_v12  ;;  %v3624_v12 = vld [vmem:[#allocation5 + $0x60] sm:$0xff] }
  0x79   :  { %2434 = vmatprep.subr.mxu0 %v173_v13 }
  0x7a   :  { %2435 = vmatpush3.msra.mxu0 %v173_v13  ;;  %v3628_v13 = vld [vmem:[#allocation5 + $0x68] sm:$0xff] }
  0x7b   :  { %2436 = vmatprep.subr.mxu0 %v172_v14 }
  0x7c   :  { %2437 = vmatpush3.msra.mxu0 %v172_v14  ;;  %v3630_v14 = vld [vmem:[#allocation5 + $0x70] sm:$0xff] }
  0x7d   :  { %2438 = vmatprep.subr.mxu0 %v171_v15 }
  0x7e   :  { %2439 = vmatpush3.msra.mxu0 %v171_v15  ;;  %v3634_v15 = vld [vmem:[#allocation5 + $0x78] sm:$0xff] }
  0x7f   :  { %2440 = vmatprep.subr.mxu0 %v170_v16 }
  0x80   :  { %2441 = vmatpush3.msra.mxu0 %v170_v16  ;;  %v3641_v16 = vld [vmem:[%s4077_s5] ss:$0 sm:$0xff] }
  0x81   :  { %2443 = vmatmul.mubr.f32.vlgmr.msra.gmra.mxu0 %v3415_v17  ;;  %2522 = vmatprep.subr.mxu0 %v3417_v18 }
  0x82   :  { %2445 = vmatprep.mubr.f32.mxu0 %v3419_v19  ;;  %2523 = vmatpush3.msra.mxu0 %v3417_v18 }
  0x83   :  { %2524 = vmatprep.subr.mxu0 %v3421_v20 }
  0x84   :  { %2525 = vmatpush3.msra.mxu0 %v3421_v20 }
  0x85   :  { %2446 = vmatmul.mubr.f32.gmra.mxu0 %v3426_v21  ;;  %2526 = vmatprep.subr.mxu0 %v3468_v34 }
  0x86   :  { %2448 = vmatprep.mubr.f32.mxu0 %v3429_v22  ;;  %2527 = vmatpush3.msra.mxu0 %v3468_v34 }
  0x87   :  { %2528 = vmatprep.subr.mxu0 %v3472_v35 }
  0x88   :  { %2529 = vmatpush3.msra.mxu0 %v3472_v35 }
  0x89   :  { %2449 = vmatmul.mubr.f32.gmra.mxu0 %v3435_v23  ;;  %2530 = vmatprep.subr.mxu0 %v3476_v36 }
  0x8a   :  { %2451 = vmatprep.mubr.f32.mxu0 %v3437_v24  ;;  %2531 = vmatpush3.msra.mxu0 %v3476_v36 }
  0x8b   :  { %2532 = vmatprep.subr.mxu0 %v3480_v37 }
  0x8c   :  { %2533 = vmatpush3.msra.mxu0 %v3480_v37 }
  0x8d   :  { %2452 = vmatmul.mubr.f32.gmra.mxu0 %v3441_v25  ;;  %2534 = vmatprep.subr.mxu0 %v3484_v38 }
  0x8e   :  { %2454 = vmatprep.mubr.f32.mxu0 %v3443_v26  ;;  %2535 = vmatpush3.msra.mxu0 %v3484_v38 }
  0x8f   :  { %2536 = vmatprep.subr.mxu0 %v3488_v39 }
  0x90   :  { %2537 = vmatpush3.msra.mxu0 %v3488_v39 }
  0x91   :  { %2455 = vmatmul.mubr.f32.gmra.mxu0 %v3447_v27  ;;  %2538 = vmatprep.subr.mxu0 %v3492_v40 }
  0x92   :  { %2457 = vmatprep.mubr.f32.mxu0 %v3449_v28  ;;  %2539 = vmatpush3.msra.mxu0 %v3492_v40 }
  0x93   :  { %2540 = vmatprep.subr.mxu0 %v3496_v41 }
  0x94   :  { %2541 = vmatpush3.msra.mxu0 %v3496_v41 }
  0x95   :  { %2458 = vmatmul.mubr.f32.gmra.mxu0 %v3453_v29  ;;  %2542 = vmatprep.subr.mxu0 %v3500_v42 }
  0x96   :  { %2460 = vmatprep.mubr.f32.mxu0 %v3455_v30  ;;  %2543 = vmatpush3.msra.mxu0 %v3500_v42 }
  0x97   :  { %2544 = vmatprep.subr.mxu0 %v3504_v43 }
  0x98   :  { %2545 = vmatpush3.msra.mxu0 %v3504_v43 }
  0x99   :  { %2461 = vmatmul.mubr.f32.gmra.mxu0 %v3459_v31  ;;  %2546 = vmatprep.subr.mxu0 %v3508_v44 }
  0x9a   :  { %2463 = vmatprep.mubr.f32.mxu0 %v3461_v32  ;;  %2547 = vmatpush3.msra.mxu0 %v3508_v44 }
  0x9b   :  { %2548 = vmatprep.subr.mxu0 %v3512_v45 }
  0x9c   :  { %2549 = vmatpush3.msra.mxu0 %v3512_v45 }
  0x9d   :  { %2464 = vmatmul.mubr.f32.gmra.mxu0 %v3465_v33  ;;  %2550 = vmatprep.subr.mxu0 %v3516_v46 }
  0x9e   :  { %2551 = vmatpush3.msra.mxu0 %v3516_v46 }
  0x9f   :  { %2552 = vmatprep.subr.mxu0 %v3520_v47 }
  0xa0   :  { %2553 = vmatpush3.msra.mxu0 %v3520_v47 }
 0x141   :  { %v3527_v49 = vpop.f32.mrf.mxu0 }
 0x143   :  { %v3529_v50 = vpop.f32.mrf.mxu0 }
 0x145   :  { %v3531_v51 = vpop.f32.mrf.mxu0 }
 0x147   :  { %v3533_v52 = vpop.f32.mrf.mxu0 }
 0x149   :  { %v3535_v53 = vpop.f32.mrf.mxu0 }
 0x14b   :  { %v3537_v54 = vpop.f32.mrf.mxu0 }
 0x14d   :  { %v3539_v55 = vpop.f32.mrf.mxu0 }
 0x14f   :  { %v3541_v56 = vpop.f32.mrf.mxu0 }
 0x151   :  { %v3543_v57 = vpop.f32.mrf.mxu0 }
 0x153   :  { %v3545_v58 = vpop.f32.mrf.mxu0 }
 0x155   :  { %v3547_v59 = vpop.f32.mrf.mxu0 }
 0x157   :  { %v3549_v60 = vpop.f32.mrf.mxu0 }
 0x159   :  { %v3551_v61 = vpop.f32.mrf.mxu0 }
 0x15b   :  { %v3553_v62 = vpop.f32.mrf.mxu0 }
 0x15d   :  { %v3555_v63 = vpop.f32.mrf.mxu0 }
 0x15e   :  { %2466 = vmatprep.subr.mxu1 %v3555_v63  ;;  %2634 = vmatprep.subr.mxu0 %v3555_v63 }
 0x15f   :  { %v3559_v0 = vpop.f32.mrf.mxu0  ;;  %2467 = vmatpush3.msra.mxu1 %v3555_v63 }
 0x160   :  { %2468 = vmatprep.subr.mxu1 %v3559_v0 }
 0x161   :  { %2469 = vmatpush3.msra.mxu1 %v3559_v0 }
 0x162   :  { %2470 = vmatprep.subr.mxu1 %v3551_v61 }
 0x163   :  { %2471 = vmatpush3.msra.mxu1 %v3551_v61 }
 0x164   :  { %2472 = vmatprep.subr.mxu1 %v3553_v62 }
 0x165   :  { %2473 = vmatpush3.msra.mxu1 %v3553_v62 }
 0x166   :  { %2474 = vmatprep.subr.mxu1 %v3547_v59 }
 0x167   :  { %2475 = vmatpush3.msra.mxu1 %v3547_v59 }
 0x168   :  { %2476 = vmatprep.subr.mxu1 %v3549_v60 }
 0x169   :  { %2477 = vmatpush3.msra.mxu1 %v3549_v60 }
 0x16a   :  { %2478 = vmatprep.subr.mxu1 %v3543_v57 }
 0x16b   :  { %2479 = vmatpush3.msra.mxu1 %v3543_v57 }
 0x16c   :  { %2480 = vmatprep.subr.mxu1 %v3545_v58 }
 0x16d   :  { %2481 = vmatpush3.msra.mxu1 %v3545_v58 }
 0x16e   :  { %2482 = vmatprep.subr.mxu1 %v3539_v55 }
 0x16f   :  { %2483 = vmatpush3.msra.mxu1 %v3539_v55 }
 0x170   :  { %2484 = vmatprep.subr.mxu1 %v3541_v56 }
 0x171   :  { %2485 = vmatpush3.msra.mxu1 %v3541_v56 }
 0x172   :  { %2486 = vmatprep.subr.mxu1 %v3535_v53 }
 0x173   :  { %2487 = vmatpush3.msra.mxu1 %v3535_v53 }
 0x174   :  { %2488 = vmatprep.subr.mxu1 %v3537_v54 }
 0x175   :  { %2489 = vmatpush3.msra.mxu1 %v3537_v54 }
 0x176   :  { %2490 = vmatprep.subr.mxu1 %v3531_v51 }
 0x177   :  { %2491 = vmatpush3.msra.mxu1 %v3531_v51 }
 0x178   :  { %2492 = vmatprep.subr.mxu1 %v3533_v52 }
 0x179   :  { %2493 = vmatpush3.msra.mxu1 %v3533_v52 }
 0x17a   :  { %2494 = vmatprep.subr.mxu1 %v3527_v49 }
 0x17b   :  { %2495 = vmatpush3.msra.mxu1 %v3527_v49 }
 0x17c   :  { %2496 = vmatprep.subr.mxu1 %v3529_v50 }
 0x17d   :  { %2497 = vmatpush3.msra.mxu1 %v3529_v50 }
 0x17e   :  { %2499 = vmatmul.mubr.f32.vlgmr.msra.gmra.mxu1 %v3590_v1 }
 0x17f   :  { %2501 = vmatprep.mubr.f32.mxu1 %v3593_v2 }
 0x182   :  { %2502 = vmatmul.mubr.f32.gmra.mxu1 %v3598_v3 }
 0x183   :  { %2504 = vmatprep.mubr.f32.mxu1 %v3600_v4 }
 0x186   :  { %2505 = vmatmul.mubr.f32.gmra.mxu1 %v3604_v5 }
 0x187   :  { %2507 = vmatprep.mubr.f32.mxu1 %v3606_v6 }
 0x18a   :  { %2508 = vmatmul.mubr.f32.gmra.mxu1 %v3610_v7 }
 0x18b   :  { %2510 = vmatprep.mubr.f32.mxu1 %v3612_v8 }
 0x18e   :  { %2511 = vmatmul.mubr.f32.gmra.mxu1 %v3616_v9 }
 0x18f   :  { %2513 = vmatprep.mubr.f32.mxu1 %v3618_v10 }
 0x192   :  { %2514 = vmatmul.mubr.f32.gmra.mxu1 %v3622_v11 }
 0x193   :  { %2516 = vmatprep.mubr.f32.mxu1 %v3624_v12 }
 0x196   :  { %2517 = vmatmul.mubr.f32.gmra.mxu1 %v3628_v13 }
 0x197   :  { %2519 = vmatprep.mubr.f32.mxu1 %v3630_v14 }
 0x19a   :  { %2520 = vmatmul.mubr.f32.gmra.mxu1 %v3634_v15 }
 0x19b   :  { %2610 = vmatprep.mubr.f32.mxu1 %v3524_v48 }
 0x23e   :  { %v2500_v33 = vpop.f32.mrf.mxu1 }
 0x23f   :  { %v443_v32 = vadd.f32 %v2500_v33, %v3641_v16 }
 0x240   :  { %v437_v31 = vpop.f32.mrf.mxu1 }
 0x241   :  { %v438_v30 = vadd.f32 %v3641_v16, %v437_v31  ;;  %v517_v27 = vmax.f32 %v443_v32, 0.0 }
 0x242   :  { %v2503_v29 = vpop.f32.mrf.mxu1 }
 0x243   :  { %v516_v28 = vmax.f32 %v438_v30, 0.0  ;;  %v453_v26 = vadd.f32 %v2503_v29, %v3641_v16 }
 0x244   :  { %v447_v25 = vpop.f32.mrf.mxu1 }
 0x245   :  { %v448_v24 = vadd.f32 %v3641_v16, %v447_v25  ;;  %2554 = vmatprep.mubr.f32.mxu0 %v516_v28  ;;  %v519_v22 = vmax.f32 %v453_v26, 0.0 }
 0x246   :  { %v2506_v48 = vpop.f32.mrf.mxu1  ;;  %2555 = vmatmul.mubr.f32.vlgmr.msra.gmra.mxu0 %v517_v27 }
 0x247   :  { %v518_v23 = vmax.f32 %v448_v24, 0.0  ;;  %2635 = vmatpush3.msra.mxu0 %v3555_v63  ;;  %v463_v33 = vadd.f32 %v2506_v48, %v3641_v16 }
 0x248   :  { %2636 = vmatprep.subr.mxu0 %v3559_v0  ;;  %v457_v31 = vpop.f32.mrf.mxu1 }
 0x249   :  { %v458_v30 = vadd.f32 %v3641_v16, %v457_v31  ;;  %2637 = vmatpush3.msra.mxu0 %v3559_v0  ;;  %2557 = vmatprep.mubr.f32.mxu0 %v518_v23  ;;  %v521_v24 = vmax.f32 %v463_v33, 0.0 }
 0x24a   :  { %2638 = vmatprep.subr.mxu0 %v3551_v61  ;;  %v2509_v25 = vpop.f32.mrf.mxu1  ;;  %2558 = vmatmul.mubr.f32.gmra.mxu0 %v519_v22 }
 0x24b   :  { %v520_v28 = vmax.f32 %v458_v30, 0.0  ;;  %2639 = vmatpush3.msra.mxu0 %v3551_v61  ;;  %v473_v26 = vadd.f32 %v2509_v25, %v3641_v16 }
 0x24c   :  { %2640 = vmatprep.subr.mxu0 %v3553_v62  ;;  %v467_v27 = vpop.f32.mrf.mxu1 }
 0x24d   :  { %v468_v29 = vadd.f32 %v3641_v16, %v467_v27  ;;  %2641 = vmatpush3.msra.mxu0 %v3553_v62  ;;  %2560 = vmatprep.mubr.f32.mxu0 %v520_v28  ;;  %v523_v22 = vmax.f32 %v473_v26, 0.0 }
 0x24e   :  { %2642 = vmatprep.subr.mxu0 %v3547_v59  ;;  %v2512_v23 = vpop.f32.mrf.mxu1  ;;  %2561 = vmatmul.mubr.f32.gmra.mxu0 %v521_v24 }
 0x24f   :  { %v522_v32 = vmax.f32 %v468_v29, 0.0  ;;  %2643 = vmatpush3.msra.mxu0 %v3547_v59  ;;  %v483_v61 = vadd.f32 %v2512_v23, %v3641_v16 }
 0x250   :  { %2644 = vmatprep.subr.mxu0 %v3549_v60  ;;  %v477_v63 = vpop.f32.mrf.mxu1 }
 0x251   :  { %v478_v0 = vadd.f32 %v3641_v16, %v477_v63  ;;  %2645 = vmatpush3.msra.mxu0 %v3549_v60  ;;  %2563 = vmatprep.mubr.f32.mxu0 %v522_v32  ;;  %v525_v33 = vmax.f32 %v483_v61, 0.0  ;;  %v3691_v61 = vld [vmem:[#allocation7 + $0x10] sm:$0xff] }
 0x252   :  { %2646 = vmatprep.subr.mxu0 %v3543_v57  ;;  %v2515_v62 = vpop.f32.mrf.mxu1  ;;  %2564 = vmatmul.mubr.f32.gmra.mxu0 %v523_v22  ;;  %v3704_v63 = vld [vmem:[#allocation7 + $0x30] sm:$0xff] }
 0x253   :  { %v524_v48 = vmax.f32 %v478_v0, 0.0  ;;  %2647 = vmatpush3.msra.mxu0 %v3543_v57  ;;  %v493_v59 = vadd.f32 %v2515_v62, %v3641_v16  ;;  %v3710_v0 = vld [vmem:[#allocation7 + $0x40] sm:$0xff]  ;;  %v3714_v62 = vld [vmem:[#allocation7 + $0x48] sm:$0xff] }
 0x254   :  { %2648 = vmatprep.subr.mxu0 %v3545_v58  ;;  %v487_v31 = vpop.f32.mrf.mxu1 }
 0x255   :  { %v488_v30 = vadd.f32 %v3641_v16, %v487_v31  ;;  %2649 = vmatpush3.msra.mxu0 %v3545_v58  ;;  %2566 = vmatprep.mubr.f32.mxu0 %v524_v48  ;;  %v527_v28 = vmax.f32 %v493_v59, 0.0  ;;  %v3716_v48 = vld [vmem:[#allocation7 + $0x50] sm:$0xff]  ;;  %v3722_v59 = vld [vmem:[#allocation7 + $0x60] sm:$0xff]  ;;  %v3726_v31 = vld [vmem:[#allocation7 + $0x68] sm:$0xff] }
 0x256   :  { %2650 = vmatprep.subr.mxu0 %v3539_v55  ;;  %v2518_v60 = vpop.f32.mrf.mxu1  ;;  %2567 = vmatmul.mubr.f32.gmra.mxu0 %v525_v33  ;;  %v3720_v33 = vld [vmem:[#allocation7 + $0x58] sm:$0xff]  ;;  %4113 = vst [vmem:[#allocation38_spill] sm:$0xff] %v3722_v59  ;;  %4114 = vst [vmem:[#allocation39_spill] sm:$0xff] %v3726_v31 }
 0x257   :  { %v526_v25 = vmax.f32 %v488_v30, 0.0  ;;  %2651 = vmatpush3.msra.mxu0 %v3539_v55  ;;  %v503_v57 = vadd.f32 %v2518_v60, %v3641_v16  ;;  %v3728_v30 = vld [vmem:[#allocation7 + $0x70] sm:$0xff]  ;;  %v3732_v60 = vld [vmem:[#allocation7 + $0x78] sm:$0xff] }
 0x258   :  { %2652 = vmatprep.subr.mxu0 %v3541_v56  ;;  %v497_v24 = vpop.f32.mrf.mxu1  ;;  %4115 = vst [vmem:[#allocation40_spill] sm:$0xff] %v3728_v30 }
 0x259   :  { %v498_v26 = vadd.f32 %v3641_v16, %v497_v24  ;;  %2653 = vmatpush3.msra.mxu0 %v3541_v56  ;;  %2569 = vmatprep.mubr.f32.mxu0 %v526_v25  ;;  %v529_v29 = vmax.f32 %v503_v57, 0.0 }
 0x25a   :  { %2654 = vmatprep.subr.mxu0 %v3535_v53  ;;  %v2521_v58 = vpop.f32.mrf.mxu1  ;;  %2570 = vmatmul.mubr.f32.gmra.mxu0 %v527_v28 }
 0x25b   :  { %v528_v27 = vmax.f32 %v498_v26, 0.0  ;;  %2655 = vmatpush3.msra.mxu0 %v3535_v53  ;;  %v513_v55 = vadd.f32 %v2521_v58, %v3641_v16  ;;  %v828_v53 = vld [vmem:[#allocation7] sm:$0xff] }
 0x25c   :  { %2656 = vmatprep.subr.mxu0 %v3537_v54  ;;  %v507_v23 = vpop.f32.mrf.mxu1 }
 0x25d   :  { %v508_v32 = vadd.f32 %v3641_v16, %v507_v23  ;;  %2657 = vmatpush3.msra.mxu0 %v3537_v54  ;;  %2572 = vmatprep.mubr.f32.mxu0 %v528_v27  ;;  %v531_v22 = vmax.f32 %v513_v55, 0.0  ;;  %v3688_v54 = vld [vmem:[#allocation7 + $0x8] sm:$0xff] }
 0x25e   :  { %2658 = vmatprep.subr.mxu0 %v3531_v51  ;;  %2573 = vmatmul.mubr.f32.gmra.mxu0 %v529_v29 }
 0x25f   :  { %v530_v56 = vmax.f32 %v508_v32, 0.0  ;;  %2659 = vmatpush3.msra.mxu0 %v3531_v51  ;;  %v3696_v51 = vld [vmem:[#allocation7 + $0x18] sm:$0xff] }
 0x260   :  { %2660 = vmatprep.subr.mxu0 %v3533_v52 }
 0x261   :  { %2661 = vmatpush3.msra.mxu0 %v3533_v52  ;;  %2575 = vmatprep.mubr.f32.mxu0 %v530_v56  ;;  %v3698_v52 = vld [vmem:[#allocation7 + $0x20] sm:$0xff] }
 0x262   :  { %2662 = vmatprep.subr.mxu0 %v3527_v49  ;;  %2576 = vmatmul.mubr.f32.gmra.mxu0 %v531_v22 }
 0x263   :  { %2663 = vmatpush3.msra.mxu0 %v3527_v49  ;;  %2666 = vmatprep.mubr.f32.mxu0 %v828_v53  ;;  %v3702_v49 = vld [vmem:[#allocation7 + $0x28] sm:$0xff] }
 0x264   :  { %2664 = vmatprep.subr.mxu0 %v3529_v50 }
 0x265   :  { %2665 = vmatpush3.msra.mxu0 %v3529_v50  ;;  %v3708_v50 = vld [vmem:[#allocation7 + $0x38] sm:$0xff] }
 0x266   :  { %2667 = vmatmul.mubr.f32.vlgmr.msra.gmra.mxu0 %v3688_v54 }
 0x267   :  { %2669 = vmatprep.mubr.f32.mxu0 %v3691_v61 }
 0x26a   :  { %2670 = vmatmul.mubr.f32.gmra.mxu0 %v3696_v51 }
 0x26b   :  { %2672 = vmatprep.mubr.f32.mxu0 %v3698_v52 }
 0x26e   :  { %2673 = vmatmul.mubr.f32.gmra.mxu0 %v3702_v49 }
 0x26f   :  { %2675 = vmatprep.mubr.f32.mxu0 %v3704_v63 }
 0x272   :  { %2676 = vmatmul.mubr.f32.gmra.mxu0 %v3708_v50 }
 0x273   :  { %2678 = vmatprep.mubr.f32.mxu0 %v3710_v0 }
 0x276   :  { %2679 = vmatmul.mubr.f32.gmra.mxu0 %v3714_v62 }
 0x277   :  { %2681 = vmatprep.mubr.f32.mxu0 %v3716_v48 }
 0x27a   :  { %2682 = vmatmul.mubr.f32.gmra.mxu0 %v3720_v33 }
 0x27b   :  { %2684 = vmatprep.mubr.f32.mxu0 %v3722_v59 }
 0x27e   :  { %2685 = vmatmul.mubr.f32.gmra.mxu0 %v3726_v31 }
 0x27f   :  { %2687 = vmatprep.mubr.f32.mxu0 %v3728_v30 }
 0x282   :  { %2688 = vmatmul.mubr.f32.gmra.mxu0 %v3732_v60 }
 0x283   :  { %2778 = vmatprep.mubr.f32.mxu0 %v828_v53 }
 0x306   :  { %v2556_v25 = vpop.f32.mrf.mxu0 }
 0x308   :  { %v598_v28 = vpop.f32.mrf.mxu0 }
 0x30a   :  { %v2559_v57 = vpop.f32.mrf.mxu0 }
 0x30c   :  { %v608_v24 = vpop.f32.mrf.mxu0 }
 0x30e   :  { %v2562_v26 = vpop.f32.mrf.mxu0 }
 0x310   :  { %v618_v58 = vpop.f32.mrf.mxu0 }
 0x312   :  { %v2565_v27 = vpop.f32.mrf.mxu0 }
 0x314   :  { %v628_v29 = vpop.f32.mrf.mxu0 }
 0x316   :  { %v2568_v55 = vpop.f32.mrf.mxu0 }
 0x318   :  { %v638_v23 = vpop.f32.mrf.mxu0 }
 0x31a   :  { %v2571_v32 = vpop.f32.mrf.mxu0 }
 0x31c   :  { %v648_v56 = vpop.f32.mrf.mxu0 }
 0x31e   :  { %v2574_v22 = vpop.f32.mrf.mxu0 }
 0x320   :  { %v658_v31 = vpop.f32.mrf.mxu0 }
 0x322   :  { %v2577_v30 = vpop.f32.mrf.mxu0 }
 0x323   :  { %2578 = vmatprep.subr.mxu1 %v2577_v30 }
 0x324   :  { %v668_v59 = vpop.f32.mrf.mxu0  ;;  %2579 = vmatpush3.msra.mxu1 %v2577_v30 }
 0x325   :  { %2580 = vmatprep.subr.mxu1 %v668_v59 }
 0x326   :  { %2581 = vmatpush3.msra.mxu1 %v668_v59  ;;  %v3735_v53 = vpop.f32.mrf.mxu0 }
 0x327   :  { %2582 = vmatprep.subr.mxu1 %v2574_v22 }
 0x328   :  { %2583 = vmatpush3.msra.mxu1 %v2574_v22  ;;  %v910_v59 = vpop.f32.mrf.mxu0 }
 0x329   :  { %2584 = vmatprep.subr.mxu1 %v658_v31 }
 0x32a   :  { %2585 = vmatpush3.msra.mxu1 %v658_v31  ;;  %v3737_v31 = vpop.f32.mrf.mxu0 }
 0x32b   :  { %2586 = vmatprep.subr.mxu1 %v2571_v32 }
 0x32c   :  { %2587 = vmatpush3.msra.mxu1 %v2571_v32  ;;  %v920_v30 = vpop.f32.mrf.mxu0  ;;  %v1350_v32 = vld [vmem:[#allocation13 + $0x38] sm:$0xff] }
 0x32d   :  { %2588 = vmatprep.subr.mxu1 %v648_v56 }
 0x32e   :  { %2589 = vmatpush3.msra.mxu1 %v648_v56 }
 0x32f   :  { %2590 = vmatprep.subr.mxu1 %v2568_v55 }
 0x330   :  { %2591 = vmatpush3.msra.mxu1 %v2568_v55 }
 0x331   :  { %2592 = vmatprep.subr.mxu1 %v638_v23 }
 0x332   :  { %2593 = vmatpush3.msra.mxu1 %v638_v23 }
 0x333   :  { %2594 = vmatprep.subr.mxu1 %v2565_v27 }
 0x334   :  { %2595 = vmatpush3.msra.mxu1 %v2565_v27 }
 0x335   :  { %2596 = vmatprep.subr.mxu1 %v628_v29 }
 0x336   :  { %2597 = vmatpush3.msra.mxu1 %v628_v29  ;;  %v1351_v29 = vld [vmem:[#allocation13 + $0x40] sm:$0xff] }
 0x337   :  { %2598 = vmatprep.subr.mxu1 %v2562_v26 }
 0x338   :  { %2599 = vmatpush3.msra.mxu1 %v2562_v26 }
 0x339   :  { %2600 = vmatprep.subr.mxu1 %v618_v58 }
 0x33a   :  { %2601 = vmatpush3.msra.mxu1 %v618_v58 }
 0x33b   :  { %2602 = vmatprep.subr.mxu1 %v2559_v57 }
 0x33c   :  { %2603 = vmatpush3.msra.mxu1 %v2559_v57  ;;  %v3744_v57 = vpop.f32.mrf.mxu0 }
 0x33d   :  { %2604 = vmatprep.subr.mxu1 %v608_v24 }
 0x33e   :  { %2605 = vmatpush3.msra.mxu1 %v608_v24  ;;  %v1352_v24 = vld [vmem:[#allocation13 + $0x48] sm:$0xff] }
 0x33f   :  { %2606 = vmatprep.subr.mxu1 %v2556_v25 }
 0x340   :  { %2607 = vmatpush3.msra.mxu1 %v2556_v25 }
 0x341   :  { %2608 = vmatprep.subr.mxu1 %v598_v28 }
 0x342   :  { %2609 = vmatpush3.msra.mxu1 %v598_v28 }
 0x343   :  { %2611 = vmatmul.mubr.f32.vlgmr.msra.gmra.mxu1 %v3590_v1  ;;  %2690 = vmatprep.subr.mxu1 %v3417_v18  ;;  %v930_v1 = vpop.f32.mrf.mxu0 }
 0x344   :  { %2691 = vmatpush3.msra.mxu1 %v3417_v18  ;;  %2613 = vmatprep.mubr.f32.mxu1 %v3593_v2  ;;  %v926_v2 = vadd.f32 %v3737_v31, %v3641_v16 }
 0x345   :  { %2692 = vmatprep.subr.mxu1 %v3421_v20  ;;  %v3758_v18 = vpop.f32.mrf.mxu0 }
 0x346   :  { %2693 = vmatpush3.msra.mxu1 %v3421_v20 }
 0x347   :  { %2614 = vmatmul.mubr.f32.gmra.mxu1 %v3598_v3  ;;  %2694 = vmatprep.subr.mxu1 %v3468_v34  ;;  %v940_v20 = vpop.f32.mrf.mxu0 }
 0x348   :  { %2695 = vmatpush3.msra.mxu1 %v3468_v34  ;;  %2616 = vmatprep.mubr.f32.mxu1 %v3600_v4 }
 0x349   :  { %2696 = vmatprep.subr.mxu1 %v3472_v35  ;;  %v3772_v34 = vpop.f32.mrf.mxu0 }
 0x34a   :  { %2697 = vmatpush3.msra.mxu1 %v3472_v35  ;;  %v911_v35 = vadd.f32 %v3641_v16, %v910_v59  ;;  %v956_v58 = vadd.f32 %v3772_v34, %v3641_v16  ;;  %v1349_v59 = vld [vmem:[#allocation13 + $0x30] sm:$0xff] }
 0x34b   :  { %2617 = vmatmul.mubr.f32.gmra.mxu1 %v3604_v5  ;;  %2698 = vmatprep.subr.mxu1 %v3476_v36  ;;  %v1356_v5 = vld [vmem:[#allocation13 + $0x68] sm:$0xff] }
 0x34c   :  { %2699 = vmatpush3.msra.mxu1 %v3476_v36  ;;  %2619 = vmatprep.mubr.f32.mxu1 %v3606_v6  ;;  %v950_v36 = vpop.f32.mrf.mxu0  ;;  %v992_v6 = vmax.f32 %v926_v2, 0.0  ;;  %v998_v56 = vmax.f32 %v956_v58, 0.0  ;;  %v4119_v2 = vld [vmem:[#allocation29_spill] sm:$0xff] }
 0x34d   :  { %2700 = vmatprep.subr.mxu1 %v3480_v37 }
 0x34e   :  { %2701 = vmatpush3.msra.mxu1 %v3480_v37  ;;  %v989_v37 = vmax.f32 %v911_v35, 0.0  ;;  %v1346_v35 = vld [vmem:[#allocation13 + $0x18] sm:$0xff] }
 0x34f   :  { %2620 = vmatmul.mubr.f32.gmra.mxu1 %v3610_v7  ;;  %2702 = vmatprep.subr.mxu1 %v3484_v38  ;;  %v936_v7 = vadd.f32 %v3744_v57, %v3641_v16  ;;  %v1348_v57 = vld [vmem:[#allocation13 + $0x28] sm:$0xff] }
 0x350   :  { %2703 = vmatpush3.msra.mxu1 %v3484_v38  ;;  %2622 = vmatprep.mubr.f32.mxu1 %v3612_v8  ;;  %v921_v38 = vadd.f32 %v3641_v16, %v920_v30 }
 0x351   :  { %2704 = vmatprep.subr.mxu1 %v3488_v39 }
 0x352   :  { %2705 = vmatpush3.msra.mxu1 %v3488_v39  ;;  %v916_v39 = vadd.f32 %v3735_v53, %v3641_v16 }
 0x353   :  { %2623 = vmatmul.mubr.f32.gmra.mxu1 %v3616_v9  ;;  %2706 = vmatprep.subr.mxu1 %v3492_v40  ;;  %v1355_v9 = vld [vmem:[#allocation13 + $0x60] sm:$0xff] }
 0x354   :  { %2707 = vmatpush3.msra.mxu1 %v3492_v40  ;;  %2625 = vmatprep.mubr.f32.mxu1 %v3618_v10  ;;  %v2683_v40 = vpop.f32.mrf.mxu0  ;;  %v951_v10 = vadd.f32 %v3641_v16, %v950_v36 }
 0x355   :  { %2708 = vmatprep.subr.mxu1 %v3496_v41  ;;  %v966_v22 = vadd.f32 %v2683_v40, %v3641_v16 }
 0x356   :  { %2709 = vmatpush3.msra.mxu1 %v3496_v41  ;;  %v991_v41 = vmax.f32 %v921_v38, 0.0  ;;  %v960_v3 = vpop.f32.mrf.mxu0  ;;  %v997_v25 = vmax.f32 %v951_v10, 0.0  ;;  %v1345_v38 = vld [vmem:[#allocation13 + $0x10] sm:$0xff] }
 0x357   :  { %2626 = vmatmul.mubr.f32.gmra.mxu1 %v3622_v11  ;;  %2710 = vmatprep.subr.mxu1 %v3500_v42  ;;  %v1354_v11 = vld [vmem:[#allocation13 + $0x58] sm:$0xff]  ;;  %v961_v28 = vadd.f32 %v3641_v16, %v960_v3  ;;  %v4120_v3 = vld [vmem:[#allocation30_spill] sm:$0xff] }
 0x358   :  { %2711 = vmatpush3.msra.mxu1 %v3500_v42  ;;  %2628 = vmatprep.mubr.f32.mxu1 %v3624_v12  ;;  %v931_v42 = vadd.f32 %v3641_v16, %v930_v1  ;;  %v2686_v8 = vpop.f32.mrf.mxu0  ;;  %v994_v12 = vmax.f32 %v936_v7, 0.0  ;;  %v1000_v1 = vmax.f32 %v966_v22, 0.0 }
 0x359   :  { %2712 = vmatprep.subr.mxu1 %v3504_v43  ;;  %v999_v55 = vmax.f32 %v961_v28, 0.0 }
 0x35a   :  { %2713 = vmatpush3.msra.mxu1 %v3504_v43  ;;  %v1358_v43 = vld [vmem:[#allocation13 + $0x78] sm:$0xff]  ;;  %v993_v4 = vmax.f32 %v931_v42, 0.0  ;;  %v3070_v42 = vld [vmem:[#allocation2] sm:$0xff] }
 0x35b   :  { %2629 = vmatmul.mubr.f32.gmra.mxu1 %v3628_v13  ;;  %2714 = vmatprep.subr.mxu1 %v3508_v44  ;;  %v946_v13 = vadd.f32 %v3758_v18, %v3641_v16  ;;  %v976_v18 = vadd.f32 %v2686_v8, %v3641_v16 }
 0x35c   :  { %2715 = vmatpush3.msra.mxu1 %v3508_v44  ;;  %2631 = vmatprep.mubr.f32.mxu1 %v3630_v14  ;;  %v990_v44 = vmax.f32 %v916_v39, 0.0  ;;  %v970_v14 = vpop.f32.mrf.mxu0  ;;  %v1344_v39 = vld [vmem:[#allocation13 + $0x8] sm:$0xff] }
 0x35d   :  { %2716 = vmatprep.subr.mxu1 %v3512_v45  ;;  %v996_v26 = vmax.f32 %v946_v13, 0.0  ;;  %v971_v23 = vadd.f32 %v3641_v16, %v970_v14  ;;  %v1002_v36 = vmax.f32 %v976_v18, 0.0 }
 0x35e   :  { %2717 = vmatpush3.msra.mxu1 %v3512_v45  ;;  %v1357_v45 = vld [vmem:[#allocation13 + $0x70] sm:$0xff]  ;;  %v2689_v27 = vpop.f32.mrf.mxu0 }
 0x35f   :  { %2632 = vmatmul.mubr.f32.gmra.mxu1 %v3634_v15  ;;  %2718 = vmatprep.subr.mxu1 %v3516_v46  ;;  %v1353_v15 = vld [vmem:[#allocation13 + $0x50] sm:$0xff]  ;;  %v1001_v31 = vmax.f32 %v971_v23, 0.0 }
 0x360   :  { %2719 = vmatpush3.msra.mxu1 %v3516_v46  ;;  %2722 = vmatprep.mubr.f32.mxu1 %v989_v37  ;;  %v941_v46 = vadd.f32 %v3641_v16, %v940_v20  ;;  %v980_v53 = vpop.f32.mrf.mxu0  ;;  %v1347_v20 = vld [vmem:[#allocation13 + $0x20] sm:$0xff]  ;;  %v986_v37 = vadd.f32 %v2689_v27, %v3641_v16 }
 0x361   :  { %2720 = vmatprep.subr.mxu1 %v3520_v47  ;;  %v981_v30 = vadd.f32 %v3641_v16, %v980_v53  ;;  %v4116_v16 = vld [vmem:[#allocation26_spill] sm:$0xff] }
 0x362   :  { %2721 = vmatpush3.msra.mxu1 %v3520_v47  ;;  %v995_v47 = vmax.f32 %v941_v46, 0.0  ;;  %v1004_v40 = vmax.f32 %v986_v37, 0.0  ;;  %v4123_v46 = vld [vmem:[#allocation33_spill] sm:$0xff] }
 0x363   :  { %2723 = vmatmul.mubr.f32.vlgmr.msra.gmra.mxu1 %v990_v44  ;;  %2802 = vmatprep.subr.mxu1 %v1358_v43  ;;  %v1003_v34 = vmax.f32 %v981_v30, 0.0  ;;  %v4118_v44 = vld [vmem:[#allocation28_spill] sm:$0xff] }
 0x364   :  { %2725 = vmatprep.mubr.f32.mxu1 %v991_v41  ;;  %2803 = vmatpush3.msra.mxu1 %v1358_v43  ;;  %v1343_v41 = vld [vmem:[#allocation13] sm:$0xff]  ;;  %v4117_v43 = vld [vmem:[#allocation27_spill] sm:$0xff] }
 0x365   :  { %2804 = vmatprep.subr.mxu1 %v1357_v45 }
 0x366   :  { %2805 = vmatpush3.msra.mxu1 %v1357_v45  ;;  %v4121_v45 = vld [vmem:[#allocation31_spill] sm:$0xff] }
 0x367   :  { %2726 = vmatmul.mubr.f32.gmra.mxu1 %v992_v6  ;;  %2806 = vmatprep.subr.mxu1 %v1356_v5 }
 0x368   :  { %2728 = vmatprep.mubr.f32.mxu1 %v993_v4  ;;  %2807 = vmatpush3.msra.mxu1 %v1356_v5  ;;  %v4122_v4 = vld [vmem:[#allocation32_spill] sm:$0xff]  ;;  %v4127_v5 = vld [vmem:[#allocation37_spill] sm:$0xff] }
 0x369   :  { %2808 = vmatprep.subr.mxu1 %v1355_v9 }
 0x36a   :  { %2809 = vmatpush3.msra.mxu1 %v1355_v9 }
 0x36b   :  { %2729 = vmatmul.mubr.f32.gmra.mxu1 %v994_v12  ;;  %2810 = vmatprep.subr.mxu1 %v1354_v11 }
 0x36c   :  { %2731 = vmatprep.mubr.f32.mxu1 %v995_v47  ;;  %2811 = vmatpush3.msra.mxu1 %v1354_v11 }
 0x36d   :  { %2812 = vmatprep.subr.mxu1 %v1353_v15 }
 0x36e   :  { %2813 = vmatpush3.msra.mxu1 %v1353_v15 }
 0x36f   :  { %2732 = vmatmul.mubr.f32.gmra.mxu1 %v996_v26  ;;  %2814 = vmatprep.subr.mxu1 %v1352_v24 }
 0x370   :  { %2734 = vmatprep.mubr.f32.mxu1 %v997_v25  ;;  %2815 = vmatpush3.msra.mxu1 %v1352_v24 }
 0x371   :  { %2816 = vmatprep.subr.mxu1 %v1351_v29 }
 0x372   :  { %2817 = vmatpush3.msra.mxu1 %v1351_v29 }
 0x373   :  { %2735 = vmatmul.mubr.f32.gmra.mxu1 %v998_v56  ;;  %2818 = vmatprep.subr.mxu1 %v1350_v32 }
 0x374   :  { %2737 = vmatprep.mubr.f32.mxu1 %v999_v55  ;;  %2819 = vmatpush3.msra.mxu1 %v1350_v32 }
 0x375   :  { %2820 = vmatprep.subr.mxu1 %v1349_v59 }
 0x376   :  { %2821 = vmatpush3.msra.mxu1 %v1349_v59 }
 0x377   :  { %2738 = vmatmul.mubr.f32.gmra.mxu1 %v1000_v1  ;;  %2822 = vmatprep.subr.mxu1 %v1348_v57 }
 0x378   :  { %2740 = vmatprep.mubr.f32.mxu1 %v1001_v31  ;;  %2823 = vmatpush3.msra.mxu1 %v1348_v57 }
 0x379   :  { %2824 = vmatprep.subr.mxu1 %v1347_v20 }
 0x37a   :  { %2825 = vmatpush3.msra.mxu1 %v1347_v20 }
 0x37b   :  { %2741 = vmatmul.mubr.f32.gmra.mxu1 %v1002_v36  ;;  %2826 = vmatprep.subr.mxu1 %v1346_v35 }
 0x37c   :  { %2743 = vmatprep.mubr.f32.mxu1 %v1003_v34  ;;  %2827 = vmatpush3.msra.mxu1 %v1346_v35 }
 0x37d   :  { %2828 = vmatprep.subr.mxu1 %v1345_v38 }
 0x37e   :  { %2829 = vmatpush3.msra.mxu1 %v1345_v38 }
 0x37f   :  { %2744 = vmatmul.mubr.f32.gmra.mxu1 %v1004_v40  ;;  %2830 = vmatprep.subr.mxu1 %v1344_v39 }
 0x380   :  { %2831 = vmatpush3.msra.mxu1 %v1344_v39  ;;  %2834 = vmatprep.mubr.f32.mxu1 %v3070_v42 }
 0x381   :  { %2832 = vmatprep.subr.mxu1 %v1343_v41 }
 0x382   :  { %2833 = vmatpush3.msra.mxu1 %v1343_v41 }
 0x383   :  { %2835 = vmatmul.mubr.f32.vlgmr.msra.gmra.mxu1 %v3415_v17  ;;  %v4124_v17 = vld [vmem:[#allocation34_spill] sm:$0xff] }
 0x384   :  { %2837 = vmatprep.mubr.f32.mxu1 %v3419_v19  ;;  %v4125_v19 = vld [vmem:[#allocation35_spill] sm:$0xff] }
 0x387   :  { %2838 = vmatmul.mubr.f32.gmra.mxu1 %v3426_v21  ;;  %v4126_v21 = vld [vmem:[#allocation36_spill] sm:$0xff] }
 0x388   :  { %2840 = vmatprep.mubr.f32.mxu1 %v4116_v16 }
 0x38b   :  { %2841 = vmatmul.mubr.f32.gmra.mxu1 %v4117_v43 }
 0x38c   :  { %2843 = vmatprep.mubr.f32.mxu1 %v4118_v44 }
 0x38f   :  { %2844 = vmatmul.mubr.f32.gmra.mxu1 %v4119_v2 }
 0x390   :  { %2846 = vmatprep.mubr.f32.mxu1 %v4120_v3 }
 0x393   :  { %2847 = vmatmul.mubr.f32.gmra.mxu1 %v4121_v45 }
 0x394   :  { %2849 = vmatprep.mubr.f32.mxu1 %v4122_v4 }
 0x397   :  { %2850 = vmatmul.mubr.f32.gmra.mxu1 %v4123_v46 }
 0x398   :  { %2852 = vmatprep.mubr.f32.mxu1 %v4124_v17  ;;  %v3923_v17 = vld [vmem:[#allocation8 + $0x48] sm:$0xff] }
 0x39b   :  { %2853 = vmatmul.mubr.f32.gmra.mxu1 %v4125_v19  ;;  %v3925_v19 = vld [vmem:[#allocation8 + $0x50] sm:$0xff] }
 0x39c   :  { %2855 = vmatprep.mubr.f32.mxu1 %v4126_v21  ;;  %v3929_v21 = vld [vmem:[#allocation8 + $0x58] sm:$0xff] }
 0x39f   :  { %2856 = vmatmul.mubr.f32.gmra.mxu1 %v4127_v5  ;;  %v3931_v5 = vld [vmem:[#allocation8 + $0x60] sm:$0xff] }
 0x403   :  { %v3828_v6 = vpop.f32.mrf.mxu1 }
 0x405   :  { %v3830_v7 = vpop.f32.mrf.mxu1 }
 0x407   :  { %v3832_v8 = vpop.f32.mrf.mxu1 }
 0x409   :  { %v3834_v9 = vpop.f32.mrf.mxu1 }
 0x40b   :  { %v3836_v47 = vpop.f32.mrf.mxu1 }
 0x40d   :  { %v3838_v10 = vpop.f32.mrf.mxu1 }
 0x40f   :  { %v3840_v11 = vpop.f32.mrf.mxu1 }
 0x411   :  { %v3842_v12 = vpop.f32.mrf.mxu1 }
 0x413   :  { %v3844_v13 = vpop.f32.mrf.mxu1 }
 0x415   :  { %v3846_v14 = vpop.f32.mrf.mxu1 }
 0x417   :  { %v3848_v15 = vpop.f32.mrf.mxu1 }
 0x419   :  { %v3850_v25 = vpop.f32.mrf.mxu1 }
 0x41b   :  { %v3852_v28 = vpop.f32.mrf.mxu1 }
 0x41d   :  { %v3854_v24 = vpop.f32.mrf.mxu1 }
 0x41f   :  { %v3856_v26 = vpop.f32.mrf.mxu1 }
 0x421   :  { %v3858_v58 = vpop.f32.mrf.mxu1 }
 0x423   :  { %v2724_v27 = vpop.f32.mrf.mxu1 }
 0x425   :  { %v1071_v29 = vpop.f32.mrf.mxu1 }
 0x427   :  { %v2727_v55 = vpop.f32.mrf.mxu1 }
 0x429   :  { %v1081_v23 = vpop.f32.mrf.mxu1 }
 0x42b   :  { %v2730_v32 = vpop.f32.mrf.mxu1 }
 0x42d   :  { %v1091_v56 = vpop.f32.mrf.mxu1 }
 0x42f   :  { %v2733_v22 = vpop.f32.mrf.mxu1 }
 0x431   :  { %v1101_v53 = vpop.f32.mrf.mxu1 }
 0x433   :  { %v2736_v59 = vpop.f32.mrf.mxu1 }
 0x435   :  { %v1111_v31 = vpop.f32.mrf.mxu1 }
 0x437   :  { %v2739_v30 = vpop.f32.mrf.mxu1 }
 0x439   :  { %v1121_v57 = vpop.f32.mrf.mxu1 }
 0x43b   :  { %v2742_v1 = vpop.f32.mrf.mxu1 }
 0x43d   :  { %v1131_v18 = vpop.f32.mrf.mxu1 }
 0x43f   :  { %v2745_v20 = vpop.f32.mrf.mxu1 }
 0x440   :  { %2746 = vmatprep.subr.mxu0 %v2745_v20 }
 0x441   :  { %v1141_v34 = vpop.f32.mrf.mxu1  ;;  %2747 = vmatpush3.msra.mxu0 %v2745_v20  ;;  %v1525_v20 = vld [vmem:[#allocation14 + $0x20] sm:$0xff] }
 0x442   :  { %2748 = vmatprep.subr.mxu0 %v1141_v34 }
 0x443   :  { %2749 = vmatpush3.msra.mxu0 %v1141_v34  ;;  %v3860_v35 = vpop.f32.mrf.mxu1  ;;  %v1524_v34 = vld [vmem:[#allocation14 + $0x18] sm:$0xff] }
 0x444   :  { %2750 = vmatprep.subr.mxu0 %v2742_v1 }
 0x445   :  { %2751 = vmatpush3.msra.mxu0 %v2742_v1  ;;  %v3862_v36 = vpop.f32.mrf.mxu1  ;;  %v1527_v1 = vld [vmem:[#allocation14 + $0x30] sm:$0xff] }
 0x446   :  { %2752 = vmatprep.subr.mxu0 %v1131_v18 }
 0x447   :  { %2753 = vmatpush3.msra.mxu0 %v1131_v18  ;;  %v3864_v37 = vpop.f32.mrf.mxu1  ;;  %v1526_v18 = vld [vmem:[#allocation14 + $0x28] sm:$0xff] }
 0x448   :  { %2754 = vmatprep.subr.mxu0 %v2739_v30 }
 0x449   :  { %2755 = vmatpush3.msra.mxu0 %v2739_v30  ;;  %v3866_v38 = vpop.f32.mrf.mxu1  ;;  %v1529_v30 = vld [vmem:[#allocation14 + $0x40] sm:$0xff] }
 0x44a   :  { %2756 = vmatprep.subr.mxu0 %v1121_v57 }
 0x44b   :  { %2757 = vmatpush3.msra.mxu0 %v1121_v57  ;;  %v3868_v39 = vpop.f32.mrf.mxu1  ;;  %v1528_v57 = vld [vmem:[#allocation14 + $0x38] sm:$0xff] }
 0x44c   :  { %2758 = vmatprep.subr.mxu0 %v2736_v59 }
 0x44d   :  { %2759 = vmatpush3.msra.mxu0 %v2736_v59  ;;  %v3870_v40 = vpop.f32.mrf.mxu1  ;;  %v1531_v59 = vld [vmem:[#allocation14 + $0x50] sm:$0xff] }
 0x44e   :  { %2760 = vmatprep.subr.mxu0 %v1111_v31 }
 0x44f   :  { %2761 = vmatpush3.msra.mxu0 %v1111_v31  ;;  %v2845_v41 = vpop.f32.mrf.mxu1  ;;  %v1530_v31 = vld [vmem:[#allocation14 + $0x48] sm:$0xff] }
 0x450   :  { %2762 = vmatprep.subr.mxu0 %v2733_v22 }
 0x451   :  { %2763 = vmatpush3.msra.mxu0 %v2733_v22  ;;  %v1455_v42 = vpop.f32.mrf.mxu1  ;;  %v1533_v22 = vld [vmem:[#allocation14 + $0x60] sm:$0xff] }
 0x452   :  { %2764 = vmatprep.subr.mxu0 %v1101_v53 }
 0x453   :  { %2765 = vmatpush3.msra.mxu0 %v1101_v53  ;;  %v2848_v16 = vpop.f32.mrf.mxu1  ;;  %v1532_v53 = vld [vmem:[#allocation14 + $0x58] sm:$0xff] }
 0x454   :  { %2766 = vmatprep.subr.mxu0 %v2730_v32 }
 0x455   :  { %2767 = vmatpush3.msra.mxu0 %v2730_v32  ;;  %v1465_v43 = vpop.f32.mrf.mxu1  ;;  %v1535_v32 = vld [vmem:[#allocation14 + $0x70] sm:$0xff] }
 0x456   :  { %2768 = vmatprep.subr.mxu0 %v1091_v56 }
 0x457   :  { %2769 = vmatpush3.msra.mxu0 %v1091_v56  ;;  %v2851_v44 = vpop.f32.mrf.mxu1  ;;  %v1534_v56 = vld [vmem:[#allocation14 + $0x68] sm:$0xff] }
 0x458   :  { %2770 = vmatprep.subr.mxu0 %v2727_v55 }
 0x459   :  { %2771 = vmatpush3.msra.mxu0 %v2727_v55  ;;  %v1475_v2 = vpop.f32.mrf.mxu1  ;;  %v3941_v55 = vld [vmem:[#allocation8 + $0x78] sm:$0xff] }
 0x45a   :  { %2772 = vmatprep.subr.mxu0 %v1081_v23 }
 0x45b   :  { %2773 = vmatpush3.msra.mxu0 %v1081_v23  ;;  %v2854_v3 = vpop.f32.mrf.mxu1  ;;  %v1536_v23 = vld [vmem:[#allocation14 + $0x78] sm:$0xff] }
 0x45c   :  { %2774 = vmatprep.subr.mxu0 %v2724_v27  ;;  %2914 = vmatprep.subr.mxu1 %v1536_v23 }
 0x45d   :  { %2775 = vmatpush3.msra.mxu0 %v2724_v27  ;;  %v1485_v45 = vpop.f32.mrf.mxu1  ;;  %v3935_v27 = vld [vmem:[#allocation8 + $0x68] sm:$0xff]  ;;  %2915 = vmatpush3.msra.mxu1 %v1536_v23 }
 0x45e   :  { %2776 = vmatprep.subr.mxu0 %v1071_v29  ;;  %2916 = vmatprep.subr.mxu1 %v1535_v32 }
 0x45f   :  { %2777 = vmatpush3.msra.mxu0 %v1071_v29  ;;  %v2857_v4 = vpop.f32.mrf.mxu1  ;;  %v3937_v29 = vld [vmem:[#allocation8 + $0x70] sm:$0xff]  ;;  %2917 = vmatpush3.msra.mxu1 %v1535_v32 }
 0x460   :  { %2779 = vmatmul.mubr.f32.vlgmr.msra.gmra.mxu0 %v3688_v54  ;;  %2858 = vmatprep.subr.mxu0 %v2857_v4  ;;  %v4128_v54 = vld [vmem:[#allocation38_spill] sm:$0xff] }
 0x461   :  { %v1495_v46 = vpop.f32.mrf.mxu1  ;;  %2859 = vmatpush3.msra.mxu0 %v2857_v4  ;;  %2781 = vmatprep.mubr.f32.mxu0 %v3691_v61  ;;  %v4129_v61 = vld [vmem:[#allocation39_spill] sm:$0xff] }
 0x462   :  { %2860 = vmatprep.subr.mxu0 %v1495_v46  ;;  %2918 = vmatprep.subr.mxu1 %v1534_v56 }
 0x463   :  { %2861 = vmatpush3.msra.mxu0 %v1495_v46  ;;  %2919 = vmatpush3.msra.mxu1 %v1534_v56 }
 0x464   :  { %2782 = vmatmul.mubr.f32.gmra.mxu0 %v3696_v51  ;;  %2862 = vmatprep.subr.mxu0 %v2854_v3  ;;  %v4130_v51 = vld [vmem:[#allocation40_spill] sm:$0xff] }
 0x465   :  { %2863 = vmatpush3.msra.mxu0 %v2854_v3  ;;  %2784 = vmatprep.mubr.f32.mxu0 %v3698_v52  ;;  %v1504_v52 = vld [vmem:[#allocation8] sm:$0xff] }
 0x466   :  { %2864 = vmatprep.subr.mxu0 %v1485_v45  ;;  %2920 = vmatprep.subr.mxu1 %v1533_v22 }
 0x467   :  { %2865 = vmatpush3.msra.mxu0 %v1485_v45  ;;  %2921 = vmatpush3.msra.mxu1 %v1533_v22 }
 0x468   :  { %2785 = vmatmul.mubr.f32.gmra.mxu0 %v3702_v49  ;;  %2866 = vmatprep.subr.mxu0 %v2851_v44  ;;  %v3897_v49 = vld [vmem:[#allocation8 + $0x8] sm:$0xff] }
 0x469   :  { %2867 = vmatpush3.msra.mxu0 %v2851_v44  ;;  %2787 = vmatprep.mubr.f32.mxu0 %v3704_v63  ;;  %v3900_v63 = vld [vmem:[#allocation8 + $0x10] sm:$0xff] }
 0x46a   :  { %2868 = vmatprep.subr.mxu0 %v1475_v2  ;;  %2922 = vmatprep.subr.mxu1 %v1532_v53 }
 0x46b   :  { %2869 = vmatpush3.msra.mxu0 %v1475_v2  ;;  %2923 = vmatpush3.msra.mxu1 %v1532_v53 }
 0x46c   :  { %2788 = vmatmul.mubr.f32.gmra.mxu0 %v3708_v50  ;;  %2870 = vmatprep.subr.mxu0 %v2848_v16  ;;  %v3905_v50 = vld [vmem:[#allocation8 + $0x18] sm:$0xff] }
 0x46d   :  { %2871 = vmatpush3.msra.mxu0 %v2848_v16  ;;  %2790 = vmatprep.mubr.f32.mxu0 %v3710_v0  ;;  %v3907_v0 = vld [vmem:[#allocation8 + $0x20] sm:$0xff] }
 0x46e   :  { %2872 = vmatprep.subr.mxu0 %v1465_v43  ;;  %2924 = vmatprep.subr.mxu1 %v1531_v59 }
 0x46f   :  { %2873 = vmatpush3.msra.mxu0 %v1465_v43  ;;  %2925 = vmatpush3.msra.mxu1 %v1531_v59 }
 0x470   :  { %2791 = vmatmul.mubr.f32.gmra.mxu0 %v3714_v62  ;;  %2874 = vmatprep.subr.mxu0 %v2845_v41  ;;  %v3911_v62 = vld [vmem:[#allocation8 + $0x28] sm:$0xff] }
 0x471   :  { %2875 = vmatpush3.msra.mxu0 %v2845_v41  ;;  %2793 = vmatprep.mubr.f32.mxu0 %v3716_v48  ;;  %v3913_v48 = vld [vmem:[#allocation8 + $0x30] sm:$0xff] }
 0x472   :  { %2876 = vmatprep.subr.mxu0 %v1455_v42  ;;  %2926 = vmatprep.subr.mxu1 %v1530_v31 }
 0x473   :  { %2877 = vmatpush3.msra.mxu0 %v1455_v42  ;;  %2927 = vmatpush3.msra.mxu1 %v1530_v31 }
 0x474   :  { %2794 = vmatmul.mubr.f32.gmra.mxu0 %v3720_v33  ;;  %2878 = vmatprep.subr.mxu0 %v3868_v39  ;;  %v3917_v33 = vld [vmem:[#allocation8 + $0x38] sm:$0xff] }
 0x475   :  { %2879 = vmatpush3.msra.mxu0 %v3868_v39  ;;  %2796 = vmatprep.mubr.f32.mxu0 %v4128_v54 }
 0x476   :  { %2880 = vmatprep.subr.mxu0 %v3870_v40  ;;  %2928 = vmatprep.subr.mxu1 %v1529_v30 }
 0x477   :  { %2881 = vmatpush3.msra.mxu0 %v3870_v40  ;;  %2929 = vmatpush3.msra.mxu1 %v1529_v30 }
 0x478   :  { %2797 = vmatmul.mubr.f32.gmra.mxu0 %v4129_v61  ;;  %2882 = vmatprep.subr.mxu0 %v3864_v37 }
 0x479   :  { %2883 = vmatpush3.msra.mxu0 %v3864_v37  ;;  %2799 = vmatprep.mubr.f32.mxu0 %v4130_v51  ;;  %v1521_v37 = vld [vmem:[#allocation14] sm:$0xff] }
 0x47a   :  { %2884 = vmatprep.subr.mxu0 %v3866_v38  ;;  %2930 = vmatprep.subr.mxu1 %v1528_v57 }
 0x47b   :  { %2885 = vmatpush3.msra.mxu0 %v3866_v38  ;;  %2931 = vmatpush3.msra.mxu1 %v1528_v57  ;;  %v3947_v38 = vld [vmem:[%s4079_s7] ss:$0 sm:$0xff] }
 0x47c   :  { %2800 = vmatmul.mubr.f32.gmra.mxu0 %v3732_v60  ;;  %2886 = vmatprep.subr.mxu0 %v3860_v35  ;;  %v3919_v60 = vld [vmem:[#allocation8 + $0x40] sm:$0xff]  ;;  %v755_v40 = vadd.f32 %v3828_v6, %v3947_v38  ;;  %v750_v16 = vadd.f32 %v3947_v38, %v3830_v7  ;;  %v765_v3 = vadd.f32 %v3832_v8, %v3947_v38 }
 0x47d   :  { %2887 = vmatpush3.msra.mxu0 %v3860_v35  ;;  %2890 = vmatprep.mubr.f32.mxu0 %v1504_v52  ;;  %v1523_v35 = vld [vmem:[#allocation14 + $0x10] sm:$0xff]  ;;  %v760_v6 = vadd.f32 %v3947_v38, %v3834_v9  ;;  %v775_v23 = vadd.f32 %v3836_v47, %v3947_v38  ;;  %v770_v53 = vadd.f32 %v3947_v38, %v3838_v10 }
 0x47e   :  { %2888 = vmatprep.subr.mxu0 %v3862_v36  ;;  %2932 = vmatprep.subr.mxu1 %v1527_v1  ;;  %v785_v57 = vadd.f32 %v3840_v11, %v3947_v38 }
 0x47f   :  { %2889 = vmatpush3.msra.mxu0 %v3862_v36  ;;  %2933 = vmatpush3.msra.mxu1 %v1527_v1  ;;  %v1522_v36 = vld [vmem:[#allocation14 + $0x8] sm:$0xff] }
 0x480   :  { %2891 = vmatmul.mubr.f32.vlgmr.msra.gmra.mxu0 %v3897_v49  ;;  %2934 = vmatprep.subr.mxu1 %v1526_v18 }
 0x481   :  { %2893 = vmatprep.mubr.f32.mxu0 %v3900_v63  ;;  %2935 = vmatpush3.msra.mxu1 %v1526_v18 }
 0x482   :  { %2936 = vmatprep.subr.mxu1 %v1525_v20 }
 0x483   :  { %2937 = vmatpush3.msra.mxu1 %v1525_v20 }
 0x484   :  { %2894 = vmatmul.mubr.f32.gmra.mxu0 %v3905_v50  ;;  %2938 = vmatprep.subr.mxu1 %v1524_v34 }
 0x485   :  { %2896 = vmatprep.mubr.f32.mxu0 %v3907_v0  ;;  %2939 = vmatpush3.msra.mxu1 %v1524_v34  ;;  %v780_v34 = vadd.f32 %v3947_v38, %v3842_v12 }
 0x486   :  { %2940 = vmatprep.subr.mxu1 %v1523_v35 }
 0x487   :  { %2941 = vmatpush3.msra.mxu1 %v1523_v35 }
 0x488   :  { %2897 = vmatmul.mubr.f32.gmra.mxu0 %v3911_v62  ;;  %2942 = vmatprep.subr.mxu1 %v1522_v36 }
 0x489   :  { %2899 = vmatprep.mubr.f32.mxu0 %v3913_v48  ;;  %2943 = vmatpush3.msra.mxu1 %v1522_v36 }
 0x48a   :  { %2944 = vmatprep.subr.mxu1 %v1521_v37 }
 0x48b   :  { %2945 = vmatpush3.msra.mxu1 %v1521_v37 }
 0x48c   :  { %2900 = vmatmul.mubr.f32.gmra.mxu0 %v3917_v33 }
 0x48d   :  { %2902 = vmatprep.mubr.f32.mxu0 %v3919_v60 }
 0x490   :  { %2903 = vmatmul.mubr.f32.gmra.mxu0 %v3923_v17 }
 0x491   :  { %2905 = vmatprep.mubr.f32.mxu0 %v3925_v19 }
 0x494   :  { %2906 = vmatmul.mubr.f32.gmra.mxu0 %v3929_v21 }
 0x495   :  { %2908 = vmatprep.mubr.f32.mxu0 %v3931_v5 }
 0x498   :  { %2909 = vmatmul.mubr.f32.gmra.mxu0 %v3935_v27 }
 0x499   :  { %2911 = vmatprep.mubr.f32.mxu0 %v3937_v29 }
 0x49c   :  { %2912 = vmatmul.mubr.f32.gmra.mxu0 %v3941_v55 }
 0x49d   :  { %3002 = vmatprep.mubr.f32.mxu0 %v1504_v52 }
 0x520   :  { %v2780_v39 = vpop.f32.mrf.mxu0 }
 0x521   :  { %v1222_v41 = vadd.f32 %v2780_v39, %v3947_v38  ;;  %v795_v39 = vadd.f32 %v3844_v13, %v3947_v38 }
 0x522   :  { %v1216_v42 = vpop.f32.mrf.mxu0 }
 0x523   :  { %v1296_v43 = vadd.f32 %v1222_v41, %v755_v40  ;;  %v1217_v44 = vadd.f32 %v3947_v38, %v1216_v42 }
 0x524   :  { %v2783_v2 = vpop.f32.mrf.mxu0 }
 0x525   :  { %v1312_v45 = vmul.f32 0.5, %v1296_v43  ;;  %v1295_v4 = vadd.f32 %v1217_v44, %v750_v16  ;;  %v1232_v46 = vadd.f32 %v2783_v2, %v3947_v38  ;;  %v790_v16 = vadd.f32 %v3947_v38, %v3846_v14 }
 0x526   :  { %v1226_v54 = vpop.f32.mrf.mxu0 }
 0x527   :  { %1328 = vst [vmem:[#allocation16 + $0x8] sm:$0xff] %v1312_v45  ;;  %v1311_v61 = vmul.f32 0.5, %v1295_v4  ;;  %v1298_v51 = vadd.f32 %v1232_v46, %v765_v3  ;;  %v1227_v7 = vadd.f32 %v3947_v38, %v1226_v54  ;;  %v805_v3 = vadd.f32 %v3848_v15, %v3947_v38 }
 0x528   :  { %v2786_v52 = vpop.f32.mrf.mxu0  ;;  %v800_v54 = vadd.f32 %v3947_v38, %v3850_v25 }
 0x529   :  { %1327 = vst [vmem:[#allocation16] sm:$0xff] %v1311_v61  ;;  %v1314_v32 = vmul.f32 0.5, %v1298_v51  ;;  %v1297_v8 = vadd.f32 %v1227_v7, %v760_v6  ;;  %v1242_v56 = vadd.f32 %v2786_v52, %v3947_v38  ;;  %v815_v7 = vadd.f32 %v3852_v28, %v3947_v38 }
 0x52a   :  { %v1236_v22 = vpop.f32.mrf.mxu0 }
 0x52b   :  { %1330 = vst [vmem:[#allocation16 + $0x18] sm:$0xff] %v1314_v32  ;;  %v1313_v9 = vmul.f32 0.5, %v1297_v8  ;;  %v1300_v59 = vadd.f32 %v1242_v56, %v775_v23  ;;  %v1237_v31 = vadd.f32 %v3947_v38, %v1236_v22  ;;  %v810_v8 = vadd.f32 %v3947_v38, %v3854_v24 }
 0x52c   :  { %v2789_v30 = vpop.f32.mrf.mxu0 }
 0x52d   :  { %1329 = vst [vmem:[#allocation16 + $0x10] sm:$0xff] %v1313_v9  ;;  %v1316_v47 = vmul.f32 0.5, %v1300_v59  ;;  %v1299_v1 = vadd.f32 %v1237_v31, %v770_v53  ;;  %v1252_v18 = vadd.f32 %v2789_v30, %v3947_v38  ;;  %v825_v9 = vadd.f32 %v3856_v26, %v3947_v38 }
 0x52e   :  { %v1246_v20 = vpop.f32.mrf.mxu0 }
 0x52f   :  { %1332 = vst [vmem:[#allocation16 + $0x28] sm:$0xff] %v1316_v47  ;;  %v1315_v10 = vmul.f32 0.5, %v1299_v1  ;;  %v1302_v35 = vadd.f32 %v1252_v18, %v785_v57  ;;  %v1247_v36 = vadd.f32 %v3947_v38, %v1246_v20  ;;  %v820_v57 = vadd.f32 %v3947_v38, %v3858_v58  ;;  %v4000_v18 = vld [vmem:[%s4081_s9] ss:$0 sm:$0xff]  ;;  %s3295_s9 = smov [#allocation16]  }
 0x530   :  { %v2792_v37 = vpop.f32.mrf.mxu0  ;;  %s2022_s29 = sshll.u32 %s3295_s9, 4  ;;  %s2023_s29 = int_to_ptr.vmem [resolvable:$true] %s2022_s29 }
 0x531   :  { %1331 = vst [vmem:[#allocation16 + $0x20] sm:$0xff] %v1315_v10  ;;  %v1318_v11 = vmul.f32 0.5, %v1302_v35  ;;  %v1301_v40 = vadd.f32 %v1247_v36, %v780_v34  ;;  %v1262_v41 = vadd.f32 %v2792_v37, %v3947_v38  ;;  %s3231_s15 = scalar_lea.vmem %s2023_s29, 2048  ;;  %p3236_p13 = scmp.lt.s32.totalorder %s2023_s29, %s2023_s29 }
 0x532   :  { %v1256_v42 = vpop.f32.mrf.mxu0  ;;  %p3232_p12 = scmp.ne.s32.totalorder %s2023_s29, %s3231_s15  ;;  %p3237_p0 = scmp.lt.s32.totalorder %s3231_s15, %s3231_s15 }
 0x533   :  { %1334 = vst [vmem:[#allocation16 + $0x38] sm:$0xff] %v1318_v11  ;;  %v1317_v12 = vmul.f32 0.5, %v1301_v40  ;;  %v1304_v43 = vadd.f32 %v1262_v41, %v795_v39  ;;  %v1257_v44 = vadd.f32 %v3947_v38, %v1256_v42 }
 0x534   :  { %v2795_v2 = vpop.f32.mrf.mxu0  ;;  %p3238_p1 = por %p3237_p0, %p3236_p13 }
 0x535   :  { %1333 = vst [vmem:[#allocation16 + $0x30] sm:$0xff] %v1317_v12  ;;  %v1320_v13 = vmul.f32 0.5, %v1304_v43  ;;  %v1303_v45 = vadd.f32 %v1257_v44, %v790_v16  ;;  %v1272_v4 = vadd.f32 %v2795_v2, %v3947_v38 }
 0x536   :  { %v1266_v46 = vpop.f32.mrf.mxu0  ;;  %p3239_p2 = pnand %p3238_p1, %p3232_p12 }
 0x537   :  { %1336 = vst [vmem:[#allocation16 + $0x48] sm:$0xff] %v1320_v13  ;;  %v1319_v14 = vmul.f32 0.5, %v1303_v45  ;;  %v1306_v6 = vadd.f32 %v1272_v4, %v805_v3  ;;  %v1267_v61 = vadd.f32 %v3947_v38, %v1266_v46 }
 0x538   :  { %v2798_v51 = vpop.f32.mrf.mxu0 }
 0x539   :  { %1335 = vst [vmem:[#allocation16 + $0x40] sm:$0xff] %v1319_v14  ;;  %v1322_v15 = vmul.f32 0.5, %v1306_v6  ;;  %v1305_v52 = vadd.f32 %v1267_v61, %v800_v54  ;;  %v1282_v23 = vadd.f32 %v2798_v51, %v3947_v38 }
 0x53a   :  { %v1276_v32 = vpop.f32.mrf.mxu0 }
 0x53b   :  { %1338 = vst [vmem:[#allocation16 + $0x58] sm:$0xff] %v1322_v15  ;;  %v1321_v25 = vmul.f32 0.5, %v1305_v52  ;;  %v1308_v56 = vadd.f32 %v1282_v23, %v815_v7  ;;  %v1277_v22 = vadd.f32 %v3947_v38, %v1276_v32 }
 0x53c   :  { %v2801_v53 = vpop.f32.mrf.mxu0 }
 0x53d   :  { %1337 = vst [vmem:[#allocation16 + $0x50] sm:$0xff] %v1321_v25  ;;  %v1324_v28 = vmul.f32 0.5, %v1308_v56  ;;  %v1307_v59 = vadd.f32 %v1277_v22, %v810_v8  ;;  %v1292_v31 = vadd.f32 %v2801_v53, %v3947_v38 }
 0x53e   :  { %v1286_v30 = vpop.f32.mrf.mxu0 }
 0x53f   :  { %1340 = vst [vmem:[#allocation16 + $0x68] sm:$0xff] %v1324_v28  ;;  %v1323_v24 = vmul.f32 0.5, %v1307_v59  ;;  %v1310_v47 = vadd.f32 %v1292_v31, %v825_v9  ;;  %v1287_v1 = vadd.f32 %v3947_v38, %v1286_v30 }
 0x540   :  { %v2892_v26 = vpop.f32.mrf.mxu0 }
 0x541   :  { %1339 = vst [vmem:[#allocation16 + $0x60] sm:$0xff] %v1323_v24  ;;  %v1326_v20 = vmul.f32 0.5, %v1310_v47  ;;  %v1309_v34 = vadd.f32 %v1287_v1, %v820_v57  ;;  %v1616_v10 = vadd.f32 %v2892_v26, %v4000_v18 }
 0x542   :  { %v1610_v35 = vpop.f32.mrf.mxu0 }
 0x543   :  { %1342 = vst [vmem:[#allocation16 + $0x78] sm:$0xff] %v1326_v20  ;;  %v1325_v36 = vmul.f32 0.5, %v1309_v34  ;;  %v1611_v58 = vadd.f32 %v4000_v18, %v1610_v35  ;;  %v1690_v38 = vmax.f32 %v1616_v10, 0.0 }
 0x544   :  { %v2895_v37 = vpop.f32.mrf.mxu0 }
 0x545   :  { %1341 = vst [vmem:[#allocation16 + $0x70] sm:$0xff] %v1325_v36  ;;  %v1689_v39 = vmax.f32 %v1611_v58, 0.0  ;;  %v1626_v11 = vadd.f32 %v2895_v37, %v4000_v18 }
 0x546   :  { %v1620_v40 = vpop.f32.mrf.mxu0 }
 0x547   :  { %v1621_v41 = vadd.f32 %v4000_v18, %v1620_v40  ;;  %2946 = vmatprep.mubr.f32.mxu1 %v1689_v39  ;;  %v1692_v12 = vmax.f32 %v1626_v11, 0.0 }
 0x548   :  { %v2898_v42 = vpop.f32.mrf.mxu0  ;;  %2947 = vmatmul.mubr.f32.vlgmr.msra.gmra.mxu1 %v1690_v38 }
 0x549   :  { %v1691_v16 = vmax.f32 %v1621_v41, 0.0  ;;  %v1636_v43 = vadd.f32 %v2898_v42, %v4000_v18 }
 0x54a   :  { %v1630_v44 = vpop.f32.mrf.mxu0 }
 0x54b   :  { %v1631_v2 = vadd.f32 %v4000_v18, %v1630_v44  ;;  %2949 = vmatprep.mubr.f32.mxu1 %v1691_v16  ;;  %v1694_v45 = vmax.f32 %v1636_v43, 0.0 }
 0x54c   :  { %v2901_v3 = vpop.f32.mrf.mxu0  ;;  %2950 = vmatmul.mubr.f32.gmra.mxu1 %v1692_v12 }
 0x54d   :  { %v1693_v13 = vmax.f32 %v1631_v2, 0.0  ;;  %v1646_v4 = vadd.f32 %v2901_v3, %v4000_v18 }
 0x54e   :  { %v1640_v46 = vpop.f32.mrf.mxu0 }
 0x54f   :  { %v1641_v54 = vadd.f32 %v4000_v18, %v1640_v46  ;;  %2952 = vmatprep.mubr.f32.mxu1 %v1693_v13  ;;  %v1696_v61 = vmax.f32 %v1646_v4, 0.0 }
 0x550   :  { %v2904_v14 = vpop.f32.mrf.mxu0  ;;  %2953 = vmatmul.mubr.f32.gmra.mxu1 %v1694_v45 }
 0x551   :  { %v1695_v6 = vmax.f32 %v1641_v54, 0.0  ;;  %v1656_v51 = vadd.f32 %v2904_v14, %v4000_v18 }
 0x552   :  { %v1650_v7 = vpop.f32.mrf.mxu0 }
 0x553   :  { %v1651_v15 = vadd.f32 %v4000_v18, %v1650_v7  ;;  %2955 = vmatprep.mubr.f32.mxu1 %v1695_v6  ;;  %v1698_v32 = vmax.f32 %v1656_v51, 0.0 }
 0x554   :  { %v2907_v52 = vpop.f32.mrf.mxu0  ;;  %2956 = vmatmul.mubr.f32.gmra.mxu1 %v1696_v61 }
 0x555   :  { %v1697_v23 = vmax.f32 %v1651_v15, 0.0  ;;  %v1666_v8 = vadd.f32 %v2907_v52, %v4000_v18 }
 0x556   :  { %v1660_v25 = vpop.f32.mrf.mxu0 }
 0x557   :  { %v1661_v56 = vadd.f32 %v4000_v18, %v1660_v25  ;;  %2958 = vmatprep.mubr.f32.mxu1 %v1697_v23  ;;  %v1700_v9 = vmax.f32 %v1666_v8, 0.0 }
 0x558   :  { %v2910_v22 = vpop.f32.mrf.mxu0  ;;  %2959 = vmatmul.mubr.f32.gmra.mxu1 %v1698_v32 }
 0x559   :  { %v1699_v53 = vmax.f32 %v1661_v56, 0.0  ;;  %v1676_v28 = vadd.f32 %v2910_v22, %v4000_v18 }
 0x55a   :  { %v1670_v59 = vpop.f32.mrf.mxu0 }
 0x55b   :  { %v1671_v31 = vadd.f32 %v4000_v18, %v1670_v59  ;;  %2961 = vmatprep.mubr.f32.mxu1 %v1699_v53  ;;  %v1702_v24 = vmax.f32 %v1676_v28, 0.0 }
 0x55c   :  { %v2913_v30 = vpop.f32.mrf.mxu0  ;;  %2962 = vmatmul.mubr.f32.gmra.mxu1 %v1700_v9 }
 0x55d   :  { %v1701_v57 = vmax.f32 %v1671_v31, 0.0  ;;  %v1686_v47 = vadd.f32 %v2913_v30, %v4000_v18 }
 0x55e   :  { %v1680_v1 = vpop.f32.mrf.mxu0 }
 0x55f   :  { %v1681_v26 = vadd.f32 %v4000_v18, %v1680_v1  ;;  %2964 = vmatprep.mubr.f32.mxu1 %v1701_v57  ;;  %v1704_v34 = vmax.f32 %v1686_v47, 0.0 }
 0x560   :  { %2965 = vmatmul.mubr.f32.gmra.mxu1 %v1702_v24 }
 0x561   :  { %v1703_v20 = vmax.f32 %v1681_v26, 0.0 }
 0x563   :  { %2967 = vmatprep.mubr.f32.mxu1 %v1703_v20 }
 0x564   :  { %2968 = vmatmul.mubr.f32.gmra.mxu1 %v1704_v34 }
 0x565   :  { %3014 = vmatprep.mubr.f32.mxu1 %v3919_v60 }
 0x608   :  { %v4019_v10 = vpop.f32.mrf.mxu1 }
 0x60a   :  { %v4021_v35 = vpop.f32.mrf.mxu1 }
 0x60c   :  { %v4023_v36 = vpop.f32.mrf.mxu1 }
 0x60e   :  { %v4025_v58 = vpop.f32.mrf.mxu1 }
 0x610   :  { %v2954_v37 = vpop.f32.mrf.mxu1 }
 0x612   :  { %v1791_v39 = vpop.f32.mrf.mxu1 }
 0x614   :  { %v2957_v38 = vpop.f32.mrf.mxu1 }
 0x616   :  { %v1801_v18 = vpop.f32.mrf.mxu1 }
 0x618   :  { %v2960_v11 = vpop.f32.mrf.mxu1 }
 0x61a   :  { %v1811_v40 = vpop.f32.mrf.mxu1 }
 0x61c   :  { %v2963_v41 = vpop.f32.mrf.mxu1 }
 0x61e   :  { %v1821_v42 = vpop.f32.mrf.mxu1 }
 0x620   :  { %v2966_v16 = vpop.f32.mrf.mxu1 }
 0x622   :  { %v1831_v12 = vpop.f32.mrf.mxu1 }
 0x624   :  { %v2969_v43 = vpop.f32.mrf.mxu1 }
 0x625   :  { %2970 = vmatprep.subr.mxu0 %v2969_v43  ;;  %3026 = vmatprep.subr.mxu1 %v2969_v43 }
 0x626   :  { %v1841_v60 = vpop.f32.mrf.mxu1  ;;  %2971 = vmatpush3.msra.mxu0 %v2969_v43  ;;  %3042 = vmatpush3.msra.mxu1 %v2969_v43 }
 0x627   :  { %2972 = vmatprep.subr.mxu0 %v1841_v60  ;;  %3027 = vmatprep.subr.mxu1 %v1841_v60 }
 0x628   :  { %2973 = vmatpush3.msra.mxu0 %v1841_v60  ;;  %3043 = vmatpush3.msra.mxu1 %v1841_v60 }
 0x629   :  { %2974 = vmatprep.subr.mxu0 %v2966_v16  ;;  %3028 = vmatprep.subr.mxu1 %v2966_v16 }
 0x62a   :  { %2975 = vmatpush3.msra.mxu0 %v2966_v16  ;;  %3044 = vmatpush3.msra.mxu1 %v2966_v16 }
 0x62b   :  { %2976 = vmatprep.subr.mxu0 %v1831_v12  ;;  %3029 = vmatprep.subr.mxu1 %v1831_v12 }
 0x62c   :  { %2977 = vmatpush3.msra.mxu0 %v1831_v12  ;;  %3045 = vmatpush3.msra.mxu1 %v1831_v12 }
 0x62d   :  { %2978 = vmatprep.subr.mxu0 %v2963_v41  ;;  %3030 = vmatprep.subr.mxu1 %v2963_v41 }
 0x62e   :  { %2979 = vmatpush3.msra.mxu0 %v2963_v41  ;;  %3046 = vmatpush3.msra.mxu1 %v2963_v41 }
 0x62f   :  { %2980 = vmatprep.subr.mxu0 %v1821_v42  ;;  %3031 = vmatprep.subr.mxu1 %v1821_v42 }
 0x630   :  { %2981 = vmatpush3.msra.mxu0 %v1821_v42  ;;  %3047 = vmatpush3.msra.mxu1 %v1821_v42 }
 0x631   :  { %2982 = vmatprep.subr.mxu0 %v2960_v11  ;;  %3032 = vmatprep.subr.mxu1 %v2960_v11 }
 0x632   :  { %2983 = vmatpush3.msra.mxu0 %v2960_v11  ;;  %3048 = vmatpush3.msra.mxu1 %v2960_v11 }
 0x633   :  { %2984 = vmatprep.subr.mxu0 %v1811_v40  ;;  %3033 = vmatprep.subr.mxu1 %v1811_v40 }
 0x634   :  { %2985 = vmatpush3.msra.mxu0 %v1811_v40  ;;  %3049 = vmatpush3.msra.mxu1 %v1811_v40 }
 0x635   :  { %2986 = vmatprep.subr.mxu0 %v2957_v38  ;;  %3034 = vmatprep.subr.mxu1 %v2957_v38 }
 0x636   :  { %2987 = vmatpush3.msra.mxu0 %v2957_v38  ;;  %3050 = vmatpush3.msra.mxu1 %v2957_v38 }
 0x637   :  { %2988 = vmatprep.subr.mxu0 %v1801_v18  ;;  %3035 = vmatprep.subr.mxu1 %v1801_v18 }
 0x638   :  { %2989 = vmatpush3.msra.mxu0 %v1801_v18  ;;  %3051 = vmatpush3.msra.mxu1 %v1801_v18 }
 0x639   :  { %2990 = vmatprep.subr.mxu0 %v2954_v37  ;;  %3036 = vmatprep.subr.mxu1 %v2954_v37 }
 0x63a   :  { %2991 = vmatpush3.msra.mxu0 %v2954_v37  ;;  %3052 = vmatpush3.msra.mxu1 %v2954_v37 }
 0x63b   :  { %2992 = vmatprep.subr.mxu0 %v1791_v39  ;;  %3037 = vmatprep.subr.mxu1 %v1791_v39 }
 0x63c   :  { %2993 = vmatpush3.msra.mxu0 %v1791_v39  ;;  %3053 = vmatpush3.msra.mxu1 %v1791_v39 }
 0x63d   :  { %2994 = vmatprep.subr.mxu0 %v4023_v36  ;;  %3038 = vmatprep.subr.mxu1 %v4023_v36 }
 0x63e   :  { %2995 = vmatpush3.msra.mxu0 %v4023_v36  ;;  %3054 = vmatpush3.msra.mxu1 %v4023_v36 }
 0x63f   :  { %2996 = vmatprep.subr.mxu0 %v4025_v58  ;;  %3039 = vmatprep.subr.mxu1 %v4025_v58 }
 0x640   :  { %2997 = vmatpush3.msra.mxu0 %v4025_v58  ;;  %3055 = vmatpush3.msra.mxu1 %v4025_v58 }
 0x641   :  { %2998 = vmatprep.subr.mxu0 %v4019_v10  ;;  %3040 = vmatprep.subr.mxu1 %v4019_v10 }
 0x642   :  { %2999 = vmatpush3.msra.mxu0 %v4019_v10  ;;  %3056 = vmatpush3.msra.mxu1 %v4019_v10 }
 0x643   :  { %3000 = vmatprep.subr.mxu0 %v4021_v35  ;;  %3041 = vmatprep.subr.mxu1 %v4021_v35 }
 0x644   :  { %3001 = vmatpush3.msra.mxu0 %v4021_v35  ;;  %3057 = vmatpush3.msra.mxu1 %v4021_v35 }
 0x645   :  { %3003 = vmatmul.mubr.f32.vlgmr.msra.gmra.mxu0 %v3897_v49  ;;  %3015 = vmatmul.mubr.f32.vlgmr.msra.gmra.mxu1 %v3923_v17 }
 0x646   :  { %3005 = vmatprep.mubr.f32.mxu0 %v3900_v63  ;;  %3017 = vmatprep.mubr.f32.mxu1 %v3925_v19 }
 0x649   :  { %3006 = vmatmul.mubr.f32.gmra.mxu0 %v3905_v50  ;;  %3018 = vmatmul.mubr.f32.gmra.mxu1 %v3929_v21 }
 0x64a   :  { %3008 = vmatprep.mubr.f32.mxu0 %v3907_v0  ;;  %3020 = vmatprep.mubr.f32.mxu1 %v3931_v5 }
 0x64d   :  { %3009 = vmatmul.mubr.f32.gmra.mxu0 %v3911_v62  ;;  %3021 = vmatmul.mubr.f32.gmra.mxu1 %v3935_v27 }
 0x64e   :  { %3011 = vmatprep.mubr.f32.mxu0 %v3913_v48  ;;  %3023 = vmatprep.mubr.f32.mxu1 %v3937_v29 }
 0x651   :  { %3012 = vmatmul.mubr.f32.gmra.mxu0 %v3917_v33  ;;  %3024 = vmatmul.mubr.f32.gmra.mxu1 %v3941_v55 }
 0x652   :  { %3242 = shalt.err (!%p3239_p2)
}
 0x653   :  { %2028 = dma.vmem_to_hbm [thread:$0]  %s2023_s29, 2048, %s4084_s12, [#allocation4], %s3287_s30, %s3287_s30, %s3288_s14  }
 0x654   :  { %v2057_v49 = vld [vmem:[%s4083_s11] ss:$0 sm:$0xff]  ;;  %s3296_s11 = smov [#allocation17]  }
 0x655   :  { %s2034_s12 = sshll.u32 %s3296_s11, 4  ;;  %s2035_s12 = int_to_ptr.vmem [resolvable:$true] %s2034_s12 }
 0x656   :  { %s3251_s0 = scalar_lea.vmem %s2035_s12, 2048  ;;  %p3256_p4 = scmp.lt.s32.totalorder %s2035_s12, %s2035_s12 }
 0x657   :  { %p3252_p3 = scmp.ne.s32.totalorder %s2035_s12, %s3251_s0  ;;  %p3257_p5 = scmp.lt.s32.totalorder %s3251_s0, %s3251_s0 }
 0x659   :  { %p3258_p6 = por %p3257_p5, %p3256_p4 }
 0x65b   :  { %p3259_p7 = pnand %p3258_p6, %p3252_p3 }
 0x705   :  { %v3004_v63 = vpop.f32.mrf.mxu0  ;;  %v3016_v50 = vpop.f32.mrf.mxu1 }
 0x706   :  { %v1928_v0 = vadd.f32 %v3004_v63, %v2057_v49  ;;  %v1968_v62 = vadd.f32 %v3016_v50, %v2057_v49 }
 0x707   :  { %v1922_v48 = vpop.f32.mrf.mxu0  ;;  %v1962_v33 = vpop.f32.mrf.mxu1 }
 0x708   :  { %2002 = vst [vmem:[#allocation17 + $0x8] sm:$0xff] %v1928_v0  ;;  %2010 = vst [vmem:[#allocation17 + $0x48] sm:$0xff] %v1968_v62  ;;  %v1923_v17 = vadd.f32 %v2057_v49, %v1922_v48  ;;  %v1963_v19 = vadd.f32 %v2057_v49, %v1962_v33 }
 0x709   :  { %v3007_v21 = vpop.f32.mrf.mxu0  ;;  %v3019_v5 = vpop.f32.mrf.mxu1 }
 0x70a   :  { %2001 = vst [vmem:[#allocation17] sm:$0xff] %v1923_v17  ;;  %2009 = vst [vmem:[#allocation17 + $0x40] sm:$0xff] %v1963_v19  ;;  %v1938_v27 = vadd.f32 %v3007_v21, %v2057_v49  ;;  %v1978_v29 = vadd.f32 %v3019_v5, %v2057_v49 }
 0x70b   :  { %v1932_v55 = vpop.f32.mrf.mxu0  ;;  %v1972_v44 = vpop.f32.mrf.mxu1 }
 0x70c   :  { %2004 = vst [vmem:[#allocation17 + $0x18] sm:$0xff] %v1938_v27  ;;  %2012 = vst [vmem:[#allocation17 + $0x58] sm:$0xff] %v1978_v29  ;;  %v1933_v2 = vadd.f32 %v2057_v49, %v1932_v55  ;;  %v1973_v3 = vadd.f32 %v2057_v49, %v1972_v44 }
 0x70d   :  { %v3010_v13 = vpop.f32.mrf.mxu0  ;;  %v3022_v45 = vpop.f32.mrf.mxu1 }
 0x70e   :  { %2003 = vst [vmem:[#allocation17 + $0x10] sm:$0xff] %v1933_v2  ;;  %2011 = vst [vmem:[#allocation17 + $0x50] sm:$0xff] %v1973_v3  ;;  %v1948_v4 = vadd.f32 %v3010_v13, %v2057_v49  ;;  %v1988_v46 = vadd.f32 %v3022_v45, %v2057_v49 }
 0x70f   :  { %v1942_v54 = vpop.f32.mrf.mxu0  ;;  %v1982_v14 = vpop.f32.mrf.mxu1 }
 0x710   :  { %2006 = vst [vmem:[#allocation17 + $0x28] sm:$0xff] %v1948_v4  ;;  %2014 = vst [vmem:[#allocation17 + $0x68] sm:$0xff] %v1988_v46  ;;  %v1943_v6 = vadd.f32 %v2057_v49, %v1942_v54  ;;  %v1983_v61 = vadd.f32 %v2057_v49, %v1982_v14 }
 0x711   :  { %v3013_v51 = vpop.f32.mrf.mxu0  ;;  %v3025_v7 = vpop.f32.mrf.mxu1 }
 0x712   :  { %2005 = vst [vmem:[#allocation17 + $0x20] sm:$0xff] %v1943_v6  ;;  %2013 = vst [vmem:[#allocation17 + $0x60] sm:$0xff] %v1983_v61  ;;  %v1958_v15 = vadd.f32 %v3013_v51, %v2057_v49  ;;  %v1998_v52 = vadd.f32 %v3025_v7, %v2057_v49 }
 0x713   :  { %v1952_v23 = vpop.f32.mrf.mxu0  ;;  %v1992_v32 = vpop.f32.mrf.mxu1 }
 0x714   :  { %2008 = vst [vmem:[#allocation17 + $0x38] sm:$0xff] %v1958_v15  ;;  %2016 = vst [vmem:[#allocation17 + $0x78] sm:$0xff] %v1998_v52  ;;  %v1953_v8 = vadd.f32 %v2057_v49, %v1952_v23  ;;  %v1993_v25 = vadd.f32 %v2057_v49, %v1992_v32 }
 0x716   :  { %2007 = vst [vmem:[#allocation17 + $0x30] sm:$0xff] %v1953_v8  ;;  %2015 = vst [vmem:[#allocation17 + $0x70] sm:$0xff] %v1993_v25 }
 0x717   :  { %3262 = shalt.err (!%p3259_p7)
}
 0x718   :  { %2040 = dma.vmem_to_hbm [thread:$0]  %s2035_s12, 2048, %s4085_s13, [#allocation18], %s3287_s30, %s3287_s30, %s3288_s14  }
 0x719   :  { %3281 = dma.done.wait [#allocation4], 2048  }
 0x71a   :  { %3282 = vsyncadd [#allocation4], 4294965248 }
 0x71b   :  { %3283 = dma.done.wait [#allocation18], 2048  }
 0x71c   :  { %3284 = vsyncadd [#allocation18], 4294965248 }
 0x71d   :  { %2047 = vsyncpa [#allocation3], 1 }
 0x71e   :  { %2048 = vsyncpa [#allocation6], 1 }
 0x71f   :  { %2049 = vsyncpa [#allocation9], 1 }
 0x720   :  { %2050 = vsyncpa [#allocation12], 1 }
 0x721   :  { %2051 = vsyncpa [#allocation15], 1 }
 0x722   :  { %2052 = vsyncpa [#allocation4], 1 }
 0x723   :  { %2053 = vsyncpa [#allocation18], 1 }

</bundles_post_ra>
